<compile_context>
chip_gen: v7x
topology: tpu7x:2x2x1
jax: 0.10.0
libtpu: 0.0.40
codegen_flags: <defaults>
</compile_context>

<pallas_src>
import math

import jax
import jax.numpy as jnp
from jax import lax
from jax.experimental import pallas as pl
from jax.experimental.pallas import tpu as pltpu

EMBED_DIM = 256
NUM_HEADS = 4
HEAD_DIM = EMBED_DIM // NUM_HEADS
_NEG_INF = -1e30   # safe: scores / softmax stay f32 end-to-end


def _make_kernel(bt, lq, ls, ls_pad, compute_dtype):
    f32 = jnp.float32
    cdt = compute_dtype

    def kernel(x_ref, d_ref, z_ref,
               wq_ref, wk_ref, wv_ref, wo_ref, bqkv_ref, bo_ref,
               out_ref, attw_ref,
               q_s, k_s, v_s, o_s, w_s):
        xs = x_ref.shape[-1]
        ds = d_ref.shape[-1]
        zs = z_ref.shape[-1]

        # ---- full-width folded projections: 3 matmuls, output width E=256 ----
        # Flatten the bt samples into row-batched slabs so each projection sees
        # bt*L rows on the MXU.
        x2 = x_ref[...].reshape(bt * lq, xs).astype(cdt)
        d2 = d_ref[...].reshape(bt * ls_pad, ds).astype(cdt)
        z2 = z_ref[...].reshape(bt * ls_pad, zs).astype(cdt)

        q = jnp.dot(x2, wq_ref[...], preferred_element_type=f32) + bqkv_ref[0:1, :]
        k = jnp.dot(d2, wk_ref[...], preferred_element_type=f32) + bqkv_ref[1:2, :]
        v = jnp.dot(z2, wv_ref[...], preferred_element_type=f32) + bqkv_ref[2:3, :]

        # Park the full-width activations in VMEM scratch; per-head slices are
        # re-loaded below (bounds vreg pressure across the unrolled head loop).
        q_s[...] = q.reshape(bt, lq, EMBED_DIM).astype(cdt)
        k_s[...] = k.reshape(bt, ls_pad, EMBED_DIM).astype(cdt)
        v_s[...] = v.reshape(bt, ls_pad, EMBED_DIM).astype(cdt)

        # Additive key-padding mask, (1, 1, ls_pad): broadcast in the add, no
        # full (bt, lq, ls_pad) iota materialization. Hoisted out of the loop.
        if ls_pad != ls:
            kiota = lax.broadcasted_iota(jnp.int32, (1, 1, ls_pad), 2)
            mask_add = jnp.where(kiota < ls, 0.0, _NEG_INF).astype(f32)
        else:
            mask_add = None

        for h in range(NUM_HEADS):                     # static unroll over 4 heads
            lo = h * HEAD_DIM
            hi = lo + HEAD_DIM
            qh = q_s[:, :, lo:hi]                      # (bt, lq, HEAD_DIM)
            kh = k_s[:, :, lo:hi]                      # (bt, ls_pad, HEAD_DIM)
            vh = v_s[:, :, lo:hi]                      # (bt, ls_pad, HEAD_DIM)

            # Batched scores: contract last dims directly (no k^T materialized);
            # the 1/sqrt(head_dim) scale is folded into wq/bq on the host.
            s = lax.dot_general(qh, kh,
                                dimension_numbers=(((2,), (2,)), ((0,), (0,))),
                                preferred_element_type=f32)      # (bt, lq, ls_pad)
            if mask_add is not None:
                s = s + mask_add

            s = s - jnp.max(s, axis=-1, keepdims=True)
            p = jnp.exp(s)
            denom = jnp.sum(p, axis=-1, keepdims=True)
            r = pl.reciprocal(denom, approx=True)      # EUP slot
            r = r * (2.0 - denom * r)                  # one Newton step -> f32 accuracy
            p = p * r                                  # softmax probs stay f32

            # Head-summed attention weights accumulate in VMEM scratch.
            if h == 0:
                w_s[...] = p
            else:
                w_s[...] += p

            o_h = lax.dot_general(p.astype(cdt), vh,
                                  dimension_numbers=(((2,), (1,)), ((0,), (0,))),
                                  preferred_element_type=f32)    # (bt, lq, HEAD_DIM)
            # Stash this head's output in its lane slice; one full-depth
            # out-projection happens after the loop.
            o_s[:, :, lo:hi] = o_h.astype(cdt)

        # ---- out-projection at full contraction depth K=E=256 (single matmul) ----
        o_full = o_s[...].reshape(bt * lq, EMBED_DIM)
        out = jnp.dot(o_full, wo_ref[...], preferred_element_type=f32) + bo_ref[...]
        out_ref[...] = out.reshape(bt, lq, EMBED_DIM).astype(out_ref.dtype)
        attw_ref[...] = (w_s[...] * (1.0 / NUM_HEADS)).astype(attw_ref.dtype)

    return kernel


def attentive_regressor(x, d, z, params, *, compute_dtype=jnp.float32, b_tile=None):
    """x: (Lq, N, x_size), d/z: (Ls, N, d_size/z_size) -- PyTorch seq-major layout.

    Returns (attn_output (Lq, N, E) float32, avg_attn_weights (N, Lq, Ls) float32).
    compute_dtype=jnp.bfloat16 enables the bf16 MXU fast path (works on v5e/v6e/v7x;
    accumulation, softmax statistics and both outputs stay f32).
    """
    (wx, bx, wd_, bd_, wz, bz, wq, bq, wk, bk, wv, bv, wo, bo) = params
    Lq, N, xs = x.shape
    Ls, _, ds = d.shape
    zs = z.shape[2]
    scale = 1.0 / math.sqrt(HEAD_DIM)

    # ---- algebraic weight folding (host-side, one-time glue) ------------------
    wq_eff = (wx @ wq) * scale                  # (xs, E); softmax scale folded in
    bq_eff = (bx @ wq + bq) * scale             # (1, E)
    wk_eff = wd_ @ wk
    bk_eff = bd_ @ wk + bk
    wv_eff = wz @ wv
    bv_eff = bz @ wv + bv

    wq_c = wq_eff.astype(compute_dtype)
    wk_c = wk_eff.astype(compute_dtype)
    wv_c = wv_eff.astype(compute_dtype)
    wo_c = wo.astype(compute_dtype)             # (E, E), full-depth out-proj weight
    b_qkv = jnp.concatenate([bq_eff, bk_eff, bv_eff], axis=0).astype(jnp.float32)  # (3, E)
    bo_f = bo.astype(jnp.float32)

    # ---- KV padding (lane-dense attw output + row-dense k/v projections) ------
    ls_pad = ((Ls + 127) // 128) * 128

    # ---- batch tiling ----------------------------------------------------------
    if b_tile is None:
        # Target ~256 MXU rows per step (v6e/v7x MXU width) but keep >= 2 grid
        # steps so both v7x TensorCores get work and the DMA pipeline runs.
        b_tile = 1
        for cand in range(1, N + 1):
            if N % cand != 0:
                continue
            if cand > 1 and Lq % 8 != 0:   # keep in-kernel reshapes tile-aligned
                continue
            if cand * Lq > 256:
                continue
            if N >= 2 and N // cand < 2:
                continue
            b_tile = cand
    assert N % b_tile == 0, "b_tile must divide the batch size"
    bt = b_tile
    grid = (N // bt,)

    # glue: seq-major -> batch-major; cast inputs to the compute dtype so the
    # DMA'd blocks (and their double buffers) are half-size on the bf16 path;
    # pad KV length with zeros (masked in-kernel).
    xb = jnp.transpose(x, (1, 0, 2)).astype(compute_dtype)
    db = jnp.transpose(d, (1, 0, 2)).astype(compute_dtype)
    zb = jnp.transpose(z, (1, 0, 2)).astype(compute_dtype)
    if ls_pad != Ls:
        db = jnp.pad(db, ((0, 0), (0, ls_pad - Ls), (0, 0)))
        zb = jnp.pad(zb, ((0, 0), (0, ls_pad - Ls), (0, 0)))

    # ---- VMEM budget: 2x (in + out + weight) blocks + scratch, with headroom ---
    isz = jnp.dtype(compute_dtype).itemsize
    in_bytes = (bt * Lq * xs + bt * ls_pad * ds + bt * ls_pad * zs) * isz
    w_bytes = (wq_c.size + wk_c.size + wv_c.size + wo_c.size) * isz \
        + (b_qkv.size + bo_f.size) * 4
    out_bytes = bt * Lq * EMBED_DIM * 4 + bt * Lq * ls_pad * 4
    scratch_bytes = (2 * bt * Lq * EMBED_DIM + 2 * bt * ls_pad * EMBED_DIM) * isz \
        + bt * Lq * ls_pad * 4
    est = 2 * (in_bytes + out_bytes + w_bytes) + scratch_bytes
    vmem_limit = int(min(max(int(est * 1.5) + (2 << 20), 32 << 20), 64 << 20))

    def full_spec(arr):
        nd = arr.ndim
        return pl.BlockSpec(arr.shape, lambda b, _nd=nd: (0,) * _nd)
    # TODO(synk): weight specs could use pipeline_mode=pl.Buffered(1) (constant
    # index map) to drop their second VMEM buffer; left at defaults for safety.

    kernel = _make_kernel(bt, Lq, Ls, ls_pad, compute_dtype)

    out, attw_p = pl.pallas_call(
        kernel,
        out_shape=(
            jax.ShapeDtypeStruct((N, Lq, EMBED_DIM), jnp.float32),
            jax.ShapeDtypeStruct((N, Lq, ls_pad), jnp.float32),
        ),
        grid_spec=pltpu.PrefetchScalarGridSpec(
            num_scalar_prefetch=0,
            grid=grid,
            in_specs=[
                pl.BlockSpec((bt, Lq, xs), lambda b: (b, 0, 0)),
                pl.BlockSpec((bt, ls_pad, ds), lambda b: (b, 0, 0)),
                pl.BlockSpec((bt, ls_pad, zs), lambda b: (b, 0, 0)),
                full_spec(wq_c), full_spec(wk_c), full_spec(wv_c),
                full_spec(wo_c), full_spec(b_qkv), full_spec(bo_f),
            ],
            out_specs=[
                pl.BlockSpec((bt, Lq, EMBED_DIM), lambda b: (b, 0, 0)),
                pl.BlockSpec((bt, Lq, ls_pad), lambda b: (b, 0, 0)),
            ],
            scratch_shapes=[
                pltpu.VMEM((bt, Lq, EMBED_DIM), compute_dtype),      # q slab
                pltpu.VMEM((bt, ls_pad, EMBED_DIM), compute_dtype),  # k slab
                pltpu.VMEM((bt, ls_pad, EMBED_DIM), compute_dtype),  # v slab
                pltpu.VMEM((bt, Lq, EMBED_DIM), compute_dtype),      # per-head outputs
                pltpu.VMEM((bt, Lq, ls_pad), jnp.float32),           # head-summed attw
            ],
        ),
        compiler_params=pltpu.CompilerParams(
            dimension_semantics=("parallel",),
            vmem_limit_bytes=vmem_limit),
    )(xb, db, zb, wq_c, wk_c, wv_c, wo_c, b_qkv, bo_f)

    # glue: batch-major -> seq-major output; drop KV padding from the weights.
    return jnp.transpose(out, (1, 0, 2)), attw_p[:, :, :Ls]


def init_params(key, x_size, d_size, z_size, embed_dim=EMBED_DIM):
    """Deterministic synthetic parameters. Weights stored TRANSPOSED: (in, out)."""
    ks = jax.random.split(key, 14)

    def w(k, fan_in, fan_out):
        return (jax.random.normal(k, (fan_in, fan_out), jnp.float32)
                * (1.0 / math.sqrt(fan_in)))

    def b(k, fan_out):
        return jax.random.normal(k, (1, fan_out), jnp.float32) * 0.02

    wx, bx = w(ks[0], x_size, embed_dim), b(ks[1], embed_dim)
    wd_, bd_ = w(ks[2], d_size, embed_dim), b(ks[3], embed_dim)
    wz, bz = w(ks[4], z_size, embed_dim), b(ks[5], embed_dim)
    # MHA in_proj (q, k, v) and out_proj
    wq, bq = w(ks[6], embed_dim, embed_dim), b(ks[7], embed_dim)
    wk, bk = w(ks[8], embed_dim, embed_dim), b(ks[9], embed_dim)
    wv, bv = w(ks[10], embed_dim, embed_dim), b(ks[11], embed_dim)
    wo, bo = w(ks[12], embed_dim, embed_dim), b(ks[13], embed_dim)
    return (wx, bx, wd_, bd_, wz, bz, wq, bq, wk, bk, wv, bv, wo, bo)


def reference(x, d, z, params):
    """Pure-jnp reference of the same forward pass (unfused, for correctness check)."""
    (wx, bx, wd_, bd_, wz, bz, wq, bq, wk, bk, wv, bv, wo, bo) = params
    xb = jnp.transpose(x, (1, 0, 2))
    db = jnp.transpose(d, (1, 0, 2))
    zb = jnp.transpose(z, (1, 0, 2))
    q = xb @ wx + bx
    k = db @ wd_ + bd_
    v = zb @ wz + bz
    q = q @ wq + bq
    k = k @ wk + bk
    v = v @ wv + bv
    N, Lq, E = q.shape
    Ls = k.shape[1]
    qh = q.reshape(N, Lq, NUM_HEADS, HEAD_DIM).transpose(0, 2, 1, 3)
    kh = k.reshape(N, Ls, NUM_HEADS, HEAD_DIM).transpose(0, 2, 1, 3)
    vh = v.reshape(N, Ls, NUM_HEADS, HEAD_DIM).transpose(0, 2, 1, 3)
    s = jnp.einsum("nhld,nhsd->nhls", qh, kh) / math.sqrt(HEAD_DIM)
    p = jax.nn.softmax(s, axis=-1)
    o = jnp.einsum("nhls,nhsd->nhld", p, vh)
    o = o.transpose(0, 2, 1, 3).reshape(N, Lq, E)
    out = o @ wo + bo
    return jnp.transpose(out, (1, 0, 2)), p.mean(axis=1)


if __name__ == "__main__":
    # Small deterministic example: seq_q = seq_kv = 8, batch = 2, feature sizes 16.
    Lq, Ls, N = 8, 8, 2
    x_size = d_size = z_size = 16

    key = jax.random.PRNGKey(0)
    kx, kd, kz, kp = jax.random.split(key, 4)
    x = jax.random.normal(kx, (Lq, N, x_size), jnp.float32)
    d = jax.random.normal(kd, (Ls, N, d_size), jnp.float32)
    z = jax.random.normal(kz, (Ls, N, z_size), jnp.float32)
    params = init_params(kp, x_size, d_size, z_size)

    ref_out, ref_attw = reference(x, d, z, params)

    # f32 path (tight check: weight folding only changes rounding at the 1e-6 level)
    out, attw = attentive_regressor(x, d, z, params)
    out = jax.block_until_ready(out)
    attw = jax.block_until_ready(attw)
    assert out.shape == (Lq, N, EMBED_DIM) and attw.shape == (N, Lq, Ls)
    assert jnp.allclose(out, ref_out, rtol=1e-4, atol=1e-4)
    assert jnp.allclose(attw, ref_attw, rtol=1e-4, atol=1e-4)

    # bf16 MXU path (v5e/v6e/v7x): f32 accumulation + f32 softmax, loose tolerance.
    out16, attw16 = attentive_regressor(x, d, z, params, compute_dtype=jnp.bfloat16)
    out16 = jax.block_until_ready(out16)
    attw16 = jax.block_until_ready(attw16)
    assert out16.shape == (Lq, N, EMBED_DIM) and attw16.shape == (N, Lq, Ls)
    assert jnp.allclose(out16, ref_out, rtol=1e-1, atol=1e-1)
    assert jnp.allclose(attw16, ref_attw, rtol=1e-1, atol=1e-1)

    print("KERNEL_OK")
</pallas_src>

<mosaic_0001>
module attributes {stable_mosaic.version = 11 : i64} {
  func.func @kernel(%arg0: i32, %arg1: memref<1x8x16xf32, #tpu.memory_space<vmem>>, %arg2: memref<1x128x16xf32, #tpu.memory_space<vmem>>, %arg3: memref<1x128x16xf32, #tpu.memory_space<vmem>>, %arg4: memref<16x256xf32, #tpu.memory_space<vmem>>, %arg5: memref<16x256xf32, #tpu.memory_space<vmem>>, %arg6: memref<16x256xf32, #tpu.memory_space<vmem>>, %arg7: memref<256x256xf32, #tpu.memory_space<vmem>>, %arg8: memref<3x256xf32, #tpu.memory_space<vmem>>, %arg9: memref<1x256xf32, #tpu.memory_space<vmem>>, %arg10: memref<1x8x256xf32, #tpu.memory_space<vmem>>, %arg11: memref<1x8x128xf32, #tpu.memory_space<vmem>>, %arg12: memref<1x8x256xf32, #tpu.memory_space<vmem>>, %arg13: memref<1x128x256xf32, #tpu.memory_space<vmem>>, %arg14: memref<1x128x256xf32, #tpu.memory_space<vmem>>, %arg15: memref<1x8x256xf32, #tpu.memory_space<vmem>>, %arg16: memref<1x8x128xf32, #tpu.memory_space<vmem>>) attributes {dimension_semantics = [#tpu.dimension_semantics<parallel>], iteration_bounds = array<i64: 2>, scalar_prefetch = 0 : i64, scratch_operands = 5 : i64, tpu.core_type = #tpu.core_type<tc>, window_params = [{transform_indices = @transform_0, window_bounds = array<i64: 1, 8, 16>}, {transform_indices = @transform_1, window_bounds = array<i64: 1, 128, 16>}, {transform_indices = @transform_2, window_bounds = array<i64: 1, 128, 16>}, {pipeline_mode = #tpu.pipeline_mode<synchronous>, transform_indices = @transform_3, window_bounds = array<i64: 16, 256>}, {pipeline_mode = #tpu.pipeline_mode<synchronous>, transform_indices = @transform_4, window_bounds = array<i64: 16, 256>}, {pipeline_mode = #tpu.pipeline_mode<synchronous>, transform_indices = @transform_5, window_bounds = array<i64: 16, 256>}, {pipeline_mode = #tpu.pipeline_mode<synchronous>, transform_indices = @transform_6, window_bounds = array<i64: 256, 256>}, {pipeline_mode = #tpu.pipeline_mode<synchronous>, transform_indices = @transform_7, window_bounds = array<i64: 3, 256>}, {pipeline_mode = #tpu.pipeline_mode<synchronous>, transform_indices = @transform_8, window_bounds = array<i64: 1, 256>}, {transform_indices = @transform_9, window_bounds = array<i64: 1, 8, 256>}, {transform_indices = @transform_10, window_bounds = array<i64: 1, 8, 128>}]} {
    %c0 = arith.constant 0 : index
    %c0_0 = arith.constant 0 : index
    %c0_1 = arith.constant 0 : index
    %0 = vector.load %arg1[%c0, %c0_0, %c0_1] : memref<1x8x16xf32, #tpu.memory_space<vmem>>, vector<1x8x16xf32>
    %1 = vector.shape_cast %0 : vector<1x8x16xf32> to vector<8x16xf32>
    %c0_2 = arith.constant 0 : index
    %c0_3 = arith.constant 0 : index
    %c0_4 = arith.constant 0 : index
    %2 = vector.load %arg2[%c0_2, %c0_3, %c0_4] : memref<1x128x16xf32, #tpu.memory_space<vmem>>, vector<1x128x16xf32>
    %3 = vector.shape_cast %2 : vector<1x128x16xf32> to vector<128x16xf32>
    %c0_5 = arith.constant 0 : index
    %c0_6 = arith.constant 0 : index
    %c0_7 = arith.constant 0 : index
    %4 = vector.load %arg3[%c0_5, %c0_6, %c0_7] : memref<1x128x16xf32, #tpu.memory_space<vmem>>, vector<1x128x16xf32>
    %5 = vector.shape_cast %4 : vector<1x128x16xf32> to vector<128x16xf32>
    %c0_8 = arith.constant 0 : index
    %c0_9 = arith.constant 0 : index
    %6 = vector.load %arg4[%c0_8, %c0_9] : memref<16x256xf32, #tpu.memory_space<vmem>>, vector<16x256xf32>
    %cst = arith.constant dense<0.000000e+00> : vector<8x256xf32>
    %7 = tpu.matmul %1, %6, %cst {dimension_numbers = #tpu.dot_dimension_numbers<[1], [0], [0], [1], [0, 0, 1, 1], [], []>} : vector<8x16xf32>, vector<16x256xf32>, vector<8x256xf32> -> vector<8x256xf32>
    %c0_10 = arith.constant 0 : index
    %c0_11 = arith.constant 0 : index
    %8 = vector.load %arg8[%c0_10, %c0_11] : memref<3x256xf32, #tpu.memory_space<vmem>>, vector<1x256xf32>
    %9 = vector.broadcast %8 : vector<1x256xf32> to vector<8x256xf32>
    %10 = arith.addf %7, %9 : vector<8x256xf32>
    %c0_12 = arith.constant 0 : index
    %c0_13 = arith.constant 0 : index
    %11 = vector.load %arg5[%c0_12, %c0_13] : memref<16x256xf32, #tpu.memory_space<vmem>>, vector<16x256xf32>
    %cst_14 = arith.constant dense<0.000000e+00> : vector<128x256xf32>
    %12 = tpu.matmul %3, %11, %cst_14 {dimension_numbers = #tpu.dot_dimension_numbers<[1], [0], [0], [1], [0, 0, 1, 1], [], []>} : vector<128x16xf32>, vector<16x256xf32>, vector<128x256xf32> -> vector<128x256xf32>
    %c1 = arith.constant 1 : index
    %c0_15 = arith.constant 0 : index
    %13 = vector.load %arg8[%c1, %c0_15] : memref<3x256xf32, #tpu.memory_space<vmem>>, vector<1x256xf32>
    %14 = vector.broadcast %13 : vector<1x256xf32> to vector<128x256xf32>
    %15 = arith.addf %12, %14 : vector<128x256xf32>
    %c0_16 = arith.constant 0 : index
    %c0_17 = arith.constant 0 : index
    %16 = vector.load %arg6[%c0_16, %c0_17] : memref<16x256xf32, #tpu.memory_space<vmem>>, vector<16x256xf32>
    %cst_18 = arith.constant dense<0.000000e+00> : vector<128x256xf32>
    %17 = tpu.matmul %5, %16, %cst_18 {dimension_numbers = #tpu.dot_dimension_numbers<[1], [0], [0], [1], [0, 0, 1, 1], [], []>} : vector<128x16xf32>, vector<16x256xf32>, vector<128x256xf32> -> vector<128x256xf32>
    %c2 = arith.constant 2 : index
    %c0_19 = arith.constant 0 : index
    %18 = vector.load %arg8[%c2, %c0_19] : memref<3x256xf32, #tpu.memory_space<vmem>>, vector<1x256xf32>
    %19 = vector.broadcast %18 : vector<1x256xf32> to vector<128x256xf32>
    %20 = arith.addf %17, %19 : vector<128x256xf32>
    %21 = vector.shape_cast %10 : vector<8x256xf32> to vector<1x8x256xf32>
    %c0_20 = arith.constant 0 : index
    %c0_21 = arith.constant 0 : index
    %c0_22 = arith.constant 0 : index
    %22 = vector.load %arg12[%c0_20, %c0_21, %c0_22] : memref<1x8x256xf32, #tpu.memory_space<vmem>>, vector<1x8x256xf32>
    tpu.vector_store %arg12[%c0_20, %c0_21, %c0_22], %21 {strides = array<i32>} : memref<1x8x256xf32, #tpu.memory_space<vmem>>, vector<1x8x256xf32>,
    %23 = vector.shape_cast %15 : vector<128x256xf32> to vector<1x128x256xf32>
    %c0_23 = arith.constant 0 : index
    %c0_24 = arith.constant 0 : index
    %c0_25 = arith.constant 0 : index
    %24 = vector.load %arg13[%c0_23, %c0_24, %c0_25] : memref<1x128x256xf32, #tpu.memory_space<vmem>>, vector<1x128x256xf32>
    tpu.vector_store %arg13[%c0_23, %c0_24, %c0_25], %23 {strides = array<i32>} : memref<1x128x256xf32, #tpu.memory_space<vmem>>, vector<1x128x256xf32>,
    %25 = vector.shape_cast %20 : vector<128x256xf32> to vector<1x128x256xf32>
    %c0_26 = arith.constant 0 : index
    %c0_27 = arith.constant 0 : index
    %c0_28 = arith.constant 0 : index
    %26 = vector.load %arg14[%c0_26, %c0_27, %c0_28] : memref<1x128x256xf32, #tpu.memory_space<vmem>>, vector<1x128x256xf32>
    tpu.vector_store %arg14[%c0_26, %c0_27, %c0_28], %25 {strides = array<i32>} : memref<1x128x256xf32, #tpu.memory_space<vmem>>, vector<1x128x256xf32>,
    %27 = tpu.iota {dimensions = array<i32: 2>} : vector<1x1x128xi32>
    %c8_i32 = arith.constant 8 : i32
    %28 = vector.broadcast %c8_i32 : i32 to vector<1x1x128xi32>
    %29 = arith.cmpi slt, %27, %28 : vector<1x1x128xi32>
    %cst_29 = arith.constant 0.000000e+00 : f32
    %cst_30 = arith.constant -1.000000e+30 : f32
    %30 = vector.broadcast %cst_29 : f32 to vector<1x1x128xf32>
    %31 = vector.broadcast %cst_30 : f32 to vector<1x1x128xf32>
    %32 = arith.select %29, %30, %31 : vector<1x1x128xi1>, vector<1x1x128xf32>
    %c0_31 = arith.constant 0 : index
    %c0_32 = arith.constant 0 : index
    %c0_33 = arith.constant 0 : index
    %33 = vector.load %arg12[%c0_31, %c0_32, %c0_33] : memref<1x8x256xf32, #tpu.memory_space<vmem>>, vector<1x8x64xf32>
    %c0_34 = arith.constant 0 : index
    %c0_35 = arith.constant 0 : index
    %c0_36 = arith.constant 0 : index
    %34 = vector.load %arg13[%c0_34, %c0_35, %c0_36] : memref<1x128x256xf32, #tpu.memory_space<vmem>>, vector<1x128x64xf32>
    %c0_37 = arith.constant 0 : index
    %c0_38 = arith.constant 0 : index
    %c0_39 = arith.constant 0 : index
    %35 = vector.load %arg14[%c0_37, %c0_38, %c0_39] : memref<1x128x256xf32, #tpu.memory_space<vmem>>, vector<1x128x64xf32>
    %cst_40 = arith.constant dense<0.000000e+00> : vector<1x8x128xf32>
    %36 = tpu.matmul %33, %34, %cst_40 {dimension_numbers = #tpu.dot_dimension_numbers<[2], [2], [1], [1], [0, 0, 0, 1, 1, 1], [0], [0]>} : vector<1x8x64xf32>, vector<1x128x64xf32>, vector<1x8x128xf32> -> vector<1x8x128xf32>
    %37 = vector.broadcast %32 : vector<1x1x128xf32> to vector<1x8x128xf32>
    %38 = arith.addf %36, %37 : vector<1x8x128xf32>
    %cst_41 = arith.constant dense<0xFF800000> : vector<1x8xf32>
    %39 = vector.multi_reduction <maximumf>, %38, %cst_41 [2] : vector<1x8x128xf32> to vector<1x8xf32>
    %40 = vector.shape_cast %39 : vector<1x8xf32> to vector<1x8x1xf32>
    %41 = vector.broadcast %40 : vector<1x8x1xf32> to vector<1x8x128xf32>
    %42 = arith.subf %38, %41 : vector<1x8x128xf32>
    %43 = math.exp %42 : vector<1x8x128xf32>
    %cst_42 = arith.constant dense<0.000000e+00> : vector<1x8xf32>
    %44 = vector.multi_reduction <add>, %43, %cst_42 [2] : vector<1x8x128xf32> to vector<1x8xf32>
    %45 = vector.shape_cast %44 : vector<1x8xf32> to vector<1x8x1xf32>
    %46 = tpu.reciprocal %45 {approx = true} : vector<1x8x1xf32> -> vector<1x8x1xf32>
    %47 = arith.mulf %45, %46 : vector<1x8x1xf32>
    %cst_43 = arith.constant 2.000000e+00 : f32
    %48 = vector.broadcast %cst_43 : f32 to vector<1x8x1xf32>
    %49 = arith.subf %48, %47 : vector<1x8x1xf32>
    %50 = arith.mulf %46, %49 : vector<1x8x1xf32>
    %51 = vector.broadcast %50 : vector<1x8x1xf32> to vector<1x8x128xf32>
    %52 = arith.mulf %43, %51 : vector<1x8x128xf32>
    %c0_44 = arith.constant 0 : index
    %c0_45 = arith.constant 0 : index
    %c0_46 = arith.constant 0 : index
    %53 = vector.load %arg16[%c0_44, %c0_45, %c0_46] : memref<1x8x128xf32, #tpu.memory_space<vmem>>, vector<1x8x128xf32>
    tpu.vector_store %arg16[%c0_44, %c0_45, %c0_46], %52 {strides = array<i32>} : memref<1x8x128xf32, #tpu.memory_space<vmem>>, vector<1x8x128xf32>,
    %cst_47 = arith.constant dense<0.000000e+00> : vector<1x8x64xf32>
    %54 = tpu.matmul %52, %35, %cst_47 {dimension_numbers = #tpu.dot_dimension_numbers<[2], [1], [1], [2], [0, 0, 0, 1, 1, 2], [0], [0]>} : vector<1x8x128xf32>, vector<1x128x64xf32>, vector<1x8x64xf32> -> vector<1x8x64xf32>
    %c0_48 = arith.constant 0 : index
    %c0_49 = arith.constant 0 : index
    %c0_50 = arith.constant 0 : index
    %55 = vector.load %arg15[%c0_48, %c0_49, %c0_50] : memref<1x8x256xf32, #tpu.memory_space<vmem>>, vector<1x8x64xf32>
    tpu.vector_store %arg15[%c0_48, %c0_49, %c0_50], %54 {strides = array<i32>} : memref<1x8x256xf32, #tpu.memory_space<vmem>>, vector<1x8x64xf32>,
    %c0_51 = arith.constant 0 : index
    %c0_52 = arith.constant 0 : index
    %c64 = arith.constant 64 : index
    %56 = vector.load %arg12[%c0_51, %c0_52, %c64] : memref<1x8x256xf32, #tpu.memory_space<vmem>>, vector<1x8x64xf32>
    %c0_53 = arith.constant 0 : index
    %c0_54 = arith.constant 0 : index
    %c64_55 = arith.constant 64 : index
    %57 = vector.load %arg13[%c0_53, %c0_54, %c64_55] : memref<1x128x256xf32, #tpu.memory_space<vmem>>, vector<1x128x64xf32>
    %c0_56 = arith.constant 0 : index
    %c0_57 = arith.constant 0 : index
    %c64_58 = arith.constant 64 : index
    %58 = vector.load %arg14[%c0_56, %c0_57, %c64_58] : memref<1x128x256xf32, #tpu.memory_space<vmem>>, vector<1x128x64xf32>
    %cst_59 = arith.constant dense<0.000000e+00> : vector<1x8x128xf32>
    %59 = tpu.matmul %56, %57, %cst_59 {dimension_numbers = #tpu.dot_dimension_numbers<[2], [2], [1], [1], [0, 0, 0, 1, 1, 1], [0], [0]>} : vector<1x8x64xf32>, vector<1x128x64xf32>, vector<1x8x128xf32> -> vector<1x8x128xf32>
    %60 = vector.broadcast %32 : vector<1x1x128xf32> to vector<1x8x128xf32>
    %61 = arith.addf %59, %60 : vector<1x8x128xf32>
    %cst_60 = arith.constant dense<0xFF800000> : vector<1x8xf32>
    %62 = vector.multi_reduction <maximumf>, %61, %cst_60 [2] : vector<1x8x128xf32> to vector<1x8xf32>
    %63 = vector.shape_cast %62 : vector<1x8xf32> to vector<1x8x1xf32>
    %64 = vector.broadcast %63 : vector<1x8x1xf32> to vector<1x8x128xf32>
    %65 = arith.subf %61, %64 : vector<1x8x128xf32>
    %66 = math.exp %65 : vector<1x8x128xf32>
    %cst_61 = arith.constant dense<0.000000e+00> : vector<1x8xf32>
    %67 = vector.multi_reduction <add>, %66, %cst_61 [2] : vector<1x8x128xf32> to vector<1x8xf32>
    %68 = vector.shape_cast %67 : vector<1x8xf32> to vector<1x8x1xf32>
    %69 = tpu.reciprocal %68 {approx = true} : vector<1x8x1xf32> -> vector<1x8x1xf32>
    %70 = arith.mulf %68, %69 : vector<1x8x1xf32>
    %cst_62 = arith.constant 2.000000e+00 : f32
    %71 = vector.broadcast %cst_62 : f32 to vector<1x8x1xf32>
    %72 = arith.subf %71, %70 : vector<1x8x1xf32>
    %73 = arith.mulf %69, %72 : vector<1x8x1xf32>
    %74 = vector.broadcast %73 : vector<1x8x1xf32> to vector<1x8x128xf32>
    %75 = arith.mulf %66, %74 : vector<1x8x128xf32>
    %c0_63 = arith.constant 0 : index
    %c0_64 = arith.constant 0 : index
    %c0_65 = arith.constant 0 : index
    %76 = vector.load %arg16[%c0_63, %c0_64, %c0_65] : memref<1x8x128xf32, #tpu.memory_space<vmem>>, vector<1x8x128xf32>
    %77 = arith.addf %76, %75 : vector<1x8x128xf32>
    %c0_66 = arith.constant 0 : index
    %c0_67 = arith.constant 0 : index
    %c0_68 = arith.constant 0 : index
    %78 = vector.load %arg16[%c0_66, %c0_67, %c0_68] : memref<1x8x128xf32, #tpu.memory_space<vmem>>, vector<1x8x128xf32>
    tpu.vector_store %arg16[%c0_66, %c0_67, %c0_68], %77 {strides = array<i32>} : memref<1x8x128xf32, #tpu.memory_space<vmem>>, vector<1x8x128xf32>,
    %cst_69 = arith.constant dense<0.000000e+00> : vector<1x8x64xf32>
    %79 = tpu.matmul %75, %58, %cst_69 {dimension_numbers = #tpu.dot_dimension_numbers<[2], [1], [1], [2], [0, 0, 0, 1, 1, 2], [0], [0]>} : vector<1x8x128xf32>, vector<1x128x64xf32>, vector<1x8x64xf32> -> vector<1x8x64xf32>
    %c0_70 = arith.constant 0 : index
    %c0_71 = arith.constant 0 : index
    %c64_72 = arith.constant 64 : index
    %80 = vector.load %arg15[%c0_70, %c0_71, %c64_72] : memref<1x8x256xf32, #tpu.memory_space<vmem>>, vector<1x8x64xf32>
    tpu.vector_store %arg15[%c0_70, %c0_71, %c64_72], %79 {strides = array<i32>} : memref<1x8x256xf32, #tpu.memory_space<vmem>>, vector<1x8x64xf32>,
    %c0_73 = arith.constant 0 : index
    %c0_74 = arith.constant 0 : index
    %c128 = arith.constant 128 : index
    %81 = vector.load %arg12[%c0_73, %c0_74, %c128] : memref<1x8x256xf32, #tpu.memory_space<vmem>>, vector<1x8x64xf32>
    %c0_75 = arith.constant 0 : index
    %c0_76 = arith.constant 0 : index
    %c128_77 = arith.constant 128 : index
    %82 = vector.load %arg13[%c0_75, %c0_76, %c128_77] : memref<1x128x256xf32, #tpu.memory_space<vmem>>, vector<1x128x64xf32>
    %c0_78 = arith.constant 0 : index
    %c0_79 = arith.constant 0 : index
    %c128_80 = arith.constant 128 : index
    %83 = vector.load %arg14[%c0_78, %c0_79, %c128_80] : memref<1x128x256xf32, #tpu.memory_space<vmem>>, vector<1x128x64xf32>
    %cst_81 = arith.constant dense<0.000000e+00> : vector<1x8x128xf32>
    %84 = tpu.matmul %81, %82, %cst_81 {dimension_numbers = #tpu.dot_dimension_numbers<[2], [2], [1], [1], [0, 0, 0, 1, 1, 1], [0], [0]>} : vector<1x8x64xf32>, vector<1x128x64xf32>, vector<1x8x128xf32> -> vector<1x8x128xf32>
    %85 = vector.broadcast %32 : vector<1x1x128xf32> to vector<1x8x128xf32>
    %86 = arith.addf %84, %85 : vector<1x8x128xf32>
    %cst_82 = arith.constant dense<0xFF800000> : vector<1x8xf32>
    %87 = vector.multi_reduction <maximumf>, %86, %cst_82 [2] : vector<1x8x128xf32> to vector<1x8xf32>
    %88 = vector.shape_cast %87 : vector<1x8xf32> to vector<1x8x1xf32>
    %89 = vector.broadcast %88 : vector<1x8x1xf32> to vector<1x8x128xf32>
    %90 = arith.subf %86, %89 : vector<1x8x128xf32>
    %91 = math.exp %90 : vector<1x8x128xf32>
    %cst_83 = arith.constant dense<0.000000e+00> : vector<1x8xf32>
    %92 = vector.multi_reduction <add>, %91, %cst_83 [2] : vector<1x8x128xf32> to vector<1x8xf32>
    %93 = vector.shape_cast %92 : vector<1x8xf32> to vector<1x8x1xf32>
    %94 = tpu.reciprocal %93 {approx = true} : vector<1x8x1xf32> -> vector<1x8x1xf32>
    %95 = arith.mulf %93, %94 : vector<1x8x1xf32>
    %cst_84 = arith.constant 2.000000e+00 : f32
    %96 = vector.broadcast %cst_84 : f32 to vector<1x8x1xf32>
    %97 = arith.subf %96, %95 : vector<1x8x1xf32>
    %98 = arith.mulf %94, %97 : vector<1x8x1xf32>
    %99 = vector.broadcast %98 : vector<1x8x1xf32> to vector<1x8x128xf32>
    %100 = arith.mulf %91, %99 : vector<1x8x128xf32>
    %c0_85 = arith.constant 0 : index
    %c0_86 = arith.constant 0 : index
    %c0_87 = arith.constant 0 : index
    %101 = vector.load %arg16[%c0_85, %c0_86, %c0_87] : memref<1x8x128xf32, #tpu.memory_space<vmem>>, vector<1x8x128xf32>
    %102 = arith.addf %101, %100 : vector<1x8x128xf32>
    %c0_88 = arith.constant 0 : index
    %c0_89 = arith.constant 0 : index
    %c0_90 = arith.constant 0 : index
    %103 = vector.load %arg16[%c0_88, %c0_89, %c0_90] : memref<1x8x128xf32, #tpu.memory_space<vmem>>, vector<1x8x128xf32>
    tpu.vector_store %arg16[%c0_88, %c0_89, %c0_90], %102 {strides = array<i32>} : memref<1x8x128xf32, #tpu.memory_space<vmem>>, vector<1x8x128xf32>,
    %cst_91 = arith.constant dense<0.000000e+00> : vector<1x8x64xf32>
    %104 = tpu.matmul %100, %83, %cst_91 {dimension_numbers = #tpu.dot_dimension_numbers<[2], [1], [1], [2], [0, 0, 0, 1, 1, 2], [0], [0]>} : vector<1x8x128xf32>, vector<1x128x64xf32>, vector<1x8x64xf32> -> vector<1x8x64xf32>
    %c0_92 = arith.constant 0 : index
    %c0_93 = arith.constant 0 : index
    %c128_94 = arith.constant 128 : index
    %105 = vector.load %arg15[%c0_92, %c0_93, %c128_94] : memref<1x8x256xf32, #tpu.memory_space<vmem>>, vector<1x8x64xf32>
    tpu.vector_store %arg15[%c0_92, %c0_93, %c128_94], %104 {strides = array<i32>} : memref<1x8x256xf32, #tpu.memory_space<vmem>>, vector<1x8x64xf32>,
    %c0_95 = arith.constant 0 : index
    %c0_96 = arith.constant 0 : index
    %c192 = arith.constant 192 : index
    %106 = vector.load %arg12[%c0_95, %c0_96, %c192] : memref<1x8x256xf32, #tpu.memory_space<vmem>>, vector<1x8x64xf32>
    %c0_97 = arith.constant 0 : index
    %c0_98 = arith.constant 0 : index
    %c192_99 = arith.constant 192 : index
    %107 = vector.load %arg13[%c0_97, %c0_98, %c192_99] : memref<1x128x256xf32, #tpu.memory_space<vmem>>, vector<1x128x64xf32>
    %c0_100 = arith.constant 0 : index
    %c0_101 = arith.constant 0 : index
    %c192_102 = arith.constant 192 : index
    %108 = vector.load %arg14[%c0_100, %c0_101, %c192_102] : memref<1x128x256xf32, #tpu.memory_space<vmem>>, vector<1x128x64xf32>
    %cst_103 = arith.constant dense<0.000000e+00> : vector<1x8x128xf32>
    %109 = tpu.matmul %106, %107, %cst_103 {dimension_numbers = #tpu.dot_dimension_numbers<[2], [2], [1], [1], [0, 0, 0, 1, 1, 1], [0], [0]>} : vector<1x8x64xf32>, vector<1x128x64xf32>, vector<1x8x128xf32> -> vector<1x8x128xf32>
    %110 = vector.broadcast %32 : vector<1x1x128xf32> to vector<1x8x128xf32>
    %111 = arith.addf %109, %110 : vector<1x8x128xf32>
    %cst_104 = arith.constant dense<0xFF800000> : vector<1x8xf32>
    %112 = vector.multi_reduction <maximumf>, %111, %cst_104 [2] : vector<1x8x128xf32> to vector<1x8xf32>
    %113 = vector.shape_cast %112 : vector<1x8xf32> to vector<1x8x1xf32>
    %114 = vector.broadcast %113 : vector<1x8x1xf32> to vector<1x8x128xf32>
    %115 = arith.subf %111, %114 : vector<1x8x128xf32>
    %116 = math.exp %115 : vector<1x8x128xf32>
    %cst_105 = arith.constant dense<0.000000e+00> : vector<1x8xf32>
    %117 = vector.multi_reduction <add>, %116, %cst_105 [2] : vector<1x8x128xf32> to vector<1x8xf32>
    %118 = vector.shape_cast %117 : vector<1x8xf32> to vector<1x8x1xf32>
    %119 = tpu.reciprocal %118 {approx = true} : vector<1x8x1xf32> -> vector<1x8x1xf32>
    %120 = arith.mulf %118, %119 : vector<1x8x1xf32>
    %cst_106 = arith.constant 2.000000e+00 : f32
    %121 = vector.broadcast %cst_106 : f32 to vector<1x8x1xf32>
    %122 = arith.subf %121, %120 : vector<1x8x1xf32>
    %123 = arith.mulf %119, %122 : vector<1x8x1xf32>
    %124 = vector.broadcast %123 : vector<1x8x1xf32> to vector<1x8x128xf32>
    %125 = arith.mulf %116, %124 : vector<1x8x128xf32>
    %c0_107 = arith.constant 0 : index
    %c0_108 = arith.constant 0 : index
    %c0_109 = arith.constant 0 : index
    %126 = vector.load %arg16[%c0_107, %c0_108, %c0_109] : memref<1x8x128xf32, #tpu.memory_space<vmem>>, vector<1x8x128xf32>
    %127 = arith.addf %126, %125 : vector<1x8x128xf32>
    %c0_110 = arith.constant 0 : index
    %c0_111 = arith.constant 0 : index
    %c0_112 = arith.constant 0 : index
    %128 = vector.load %arg16[%c0_110, %c0_111, %c0_112] : memref<1x8x128xf32, #tpu.memory_space<vmem>>, vector<1x8x128xf32>
    tpu.vector_store %arg16[%c0_110, %c0_111, %c0_112], %127 {strides = array<i32>} : memref<1x8x128xf32, #tpu.memory_space<vmem>>, vector<1x8x128xf32>,
    %cst_113 = arith.constant dense<0.000000e+00> : vector<1x8x64xf32>
    %129 = tpu.matmul %125, %108, %cst_113 {dimension_numbers = #tpu.dot_dimension_numbers<[2], [1], [1], [2], [0, 0, 0, 1, 1, 2], [0], [0]>} : vector<1x8x128xf32>, vector<1x128x64xf32>, vector<1x8x64xf32> -> vector<1x8x64xf32>
    %c0_114 = arith.constant 0 : index
    %c0_115 = arith.constant 0 : index
    %c192_116 = arith.constant 192 : index
    %130 = vector.load %arg15[%c0_114, %c0_115, %c192_116] : memref<1x8x256xf32, #tpu.memory_space<vmem>>, vector<1x8x64xf32>
    tpu.vector_store %arg15[%c0_114, %c0_115, %c192_116], %129 {strides = array<i32>} : memref<1x8x256xf32, #tpu.memory_space<vmem>>, vector<1x8x64xf32>,
    %c0_117 = arith.constant 0 : index
    %c0_118 = arith.constant 0 : index
    %c0_119 = arith.constant 0 : index
    %131 = vector.load %arg15[%c0_117, %c0_118, %c0_119] : memref<1x8x256xf32, #tpu.memory_space<vmem>>, vector<1x8x256xf32>
    %132 = vector.shape_cast %131 : vector<1x8x256xf32> to vector<8x256xf32>
    %c0_120 = arith.constant 0 : index
    %c0_121 = arith.constant 0 : index
    %133 = vector.load %arg7[%c0_120, %c0_121] : memref<256x256xf32, #tpu.memory_space<vmem>>, vector<256x256xf32>
    %cst_122 = arith.constant dense<0.000000e+00> : vector<8x256xf32>
    %134 = tpu.matmul %132, %133, %cst_122 {dimension_numbers = #tpu.dot_dimension_numbers<[1], [0], [0], [1], [0, 0, 1, 1], [], []>} : vector<8x256xf32>, vector<256x256xf32>, vector<8x256xf32> -> vector<8x256xf32>
    %c0_123 = arith.constant 0 : index
    %c0_124 = arith.constant 0 : index
    %135 = vector.load %arg9[%c0_123, %c0_124] : memref<1x256xf32, #tpu.memory_space<vmem>>, vector<1x256xf32>
    %136 = vector.broadcast %135 : vector<1x256xf32> to vector<8x256xf32>
    %137 = arith.addf %134, %136 : vector<8x256xf32>
    %138 = vector.shape_cast %137 : vector<8x256xf32> to vector<1x8x256xf32>
    %c0_125 = arith.constant 0 : index
    %c0_126 = arith.constant 0 : index
    %c0_127 = arith.constant 0 : index
    %139 = vector.load %arg10[%c0_125, %c0_126, %c0_127] : memref<1x8x256xf32, #tpu.memory_space<vmem>>, vector<1x8x256xf32>
    tpu.vector_store %arg10[%c0_125, %c0_126, %c0_127], %138 {strides = array<i32>} : memref<1x8x256xf32, #tpu.memory_space<vmem>>, vector<1x8x256xf32>,
    %c0_128 = arith.constant 0 : index
    %c0_129 = arith.constant 0 : index
    %c0_130 = arith.constant 0 : index
    %140 = vector.load %arg16[%c0_128, %c0_129, %c0_130] : memref<1x8x128xf32, #tpu.memory_space<vmem>>, vector<1x8x128xf32>
    %cst_131 = arith.constant 2.500000e-01 : f32
    %141 = vector.broadcast %cst_131 : f32 to vector<1x8x128xf32>
    %142 = arith.mulf %140, %141 : vector<1x8x128xf32>
    %c0_132 = arith.constant 0 : index
    %c0_133 = arith.constant 0 : index
    %c0_134 = arith.constant 0 : index
    %143 = vector.load %arg11[%c0_132, %c0_133, %c0_134] : memref<1x8x128xf32, #tpu.memory_space<vmem>>, vector<1x8x128xf32>
    tpu.vector_store %arg11[%c0_132, %c0_133, %c0_134], %142 {strides = array<i32>} : memref<1x8x128xf32, #tpu.memory_space<vmem>>, vector<1x8x128xf32>,
    return
  }
  func.func @transform_0(%arg0: i32) -> (i32, i32, i32) {
    %c0_i32 = arith.constant 0 : i32
    %c0_i32_0 = arith.constant 0 : i32
    %c0_i32_1 = arith.constant 0 : i32
    return %arg0, %c0_i32, %c0_i32_0 : i32, i32, i32
  }
  func.func @transform_1(%arg0: i32) -> (i32, i32, i32) {
    %c0_i32 = arith.constant 0 : i32
    %c0_i32_0 = arith.constant 0 : i32
    %c0_i32_1 = arith.constant 0 : i32
    return %arg0, %c0_i32, %c0_i32_0 : i32, i32, i32
  }
  func.func @transform_2(%arg0: i32) -> (i32, i32, i32) {
    %c0_i32 = arith.constant 0 : i32
    %c0_i32_0 = arith.constant 0 : i32
    %c0_i32_1 = arith.constant 0 : i32
    return %arg0, %c0_i32, %c0_i32_0 : i32, i32, i32
  }
  func.func @transform_3(%arg0: i32) -> (i32, i32) {
    %c0_i32 = arith.constant 0 : i32
    %c0_i32_0 = arith.constant 0 : i32
    %c0_i32_1 = arith.constant 0 : i32
    return %c0_i32, %c0_i32_0 : i32, i32
  }
  func.func @transform_4(%arg0: i32) -> (i32, i32) {
    %c0_i32 = arith.constant 0 : i32
    %c0_i32_0 = arith.constant 0 : i32
    %c0_i32_1 = arith.constant 0 : i32
    return %c0_i32, %c0_i32_0 : i32, i32
  }
  func.func @transform_5(%arg0: i32) -> (i32, i32) {
    %c0_i32 = arith.constant 0 : i32
    %c0_i32_0 = arith.constant 0 : i32
    %c0_i32_1 = arith.constant 0 : i32
    return %c0_i32, %c0_i32_0 : i32, i32
  }
  func.func @transform_6(%arg0: i32) -> (i32, i32) {
    %c0_i32 = arith.constant 0 : i32
    %c0_i32_0 = arith.constant 0 : i32
    %c0_i32_1 = arith.constant 0 : i32
    return %c0_i32, %c0_i32_0 : i32, i32
  }
  func.func @transform_7(%arg0: i32) -> (i32, i32) {
    %c0_i32 = arith.constant 0 : i32
    %c0_i32_0 = arith.constant 0 : i32
    %c0_i32_1 = arith.constant 0 : i32
    return %c0_i32, %c0_i32_0 : i32, i32
  }
  func.func @transform_8(%arg0: i32) -> (i32, i32) {
    %c0_i32 = arith.constant 0 : i32
    %c0_i32_0 = arith.constant 0 : i32
    %c0_i32_1 = arith.constant 0 : i32
    return %c0_i32, %c0_i32_0 : i32, i32
  }
  func.func @transform_9(%arg0: i32) -> (i32, i32, i32) {
    %c0_i32 = arith.constant 0 : i32
    %c0_i32_0 = arith.constant 0 : i32
    %c0_i32_1 = arith.constant 0 : i32
    return %arg0, %c0_i32, %c0_i32_0 : i32, i32, i32
  }
  func.func @transform_10(%arg0: i32) -> (i32, i32, i32) {
    %c0_i32 = arith.constant 0 : i32
    %c0_i32_0 = arith.constant 0 : i32
    %c0_i32_1 = arith.constant 0 : i32
    return %arg0, %c0_i32, %c0_i32_0 : i32, i32, i32
  }
}

</mosaic_0001>

<bundles_post_ra>
// kernel: tpu_custom_call.1
= control target key start
LH: loop header
LB: loop body
LE: loop exit
PB: predicated region body
PF: predicated region fallthrough
CT: control target
= control target key end

     0   :  { %16 = vsyncpa [#allocation8], 0  ;;  %s4986_s0 = inlined_call_operand.vmem [shape: f32[2,8,16], index: 0, kind: input, shape index: {}]   ;;  %s4987_s1 = inlined_call_operand.vmem [shape: f32[2,128,16], index: 1, kind: input, shape index: {}]   ;;  %s4988_s2 = inlined_call_operand.vmem [shape: f32[2,128,16], index: 2, kind: input, shape index: {}]   ;;  %s4989_s3 = inlined_call_operand.vmem [shape: f32[16,256], index: 3, kind: input, shape index: {}]   ;;  %s4990_s4 = inlined_call_operand.vmem [shape: f32[16,256], index: 4, kind: input, shape index: {}]   ;;  %s4991_s5 = inlined_call_operand.hbm [shape: f32[16,256], index: 5, kind: input, shape index: {}]   ;;  %s4992_s6 = inlined_call_operand.vmem [shape: f32[256,256], index: 6, kind: input, shape index: {}]   ;;  %s4993_s7 = inlined_call_operand.hbm [shape: f32[3,256], index: 7, kind: input, shape index: {}]   ;;  %s4994_s8 = inlined_call_operand.vmem [shape: f32[1,256], index: 8, kind: input, shape index: {}]   ;;  %s4995_s9 = inlined_call_operand.hbm [shape: f32[2,8,256], index: 9, kind: output, shape index: {0}]   ;;  %s4996_s10 = inlined_call_operand.hbm [shape: f32[2,8,128], index: 10, kind: output, shape index: {1}]  }
   0x1   :  { %17 = vsyncpa [#allocation11], 0 }
   0x2   :  { %18 = vsyncpa [#allocation9], 0 }
   0x3   :  { %20 = vsyncpa [#allocation9 + $0x1], 0 }
   0x4   :  { %21 = vsyncpa [#allocation14], 0 }
   0x5   :  { %23 = vsyncpa [#allocation14 + $0x1], 0  ;;  %s3884_s13 = smov 0   ;;  %s3886_s14 = smov 0  }
   0x6   :  { %s3888_s15 = smov 0   ;;  %s3890_s16 = smov 0  }
   0x7 LB: > { %5006 = sst [smem:[#allocation19_spill]] %s3812_s15  ;;  %s3905_s17 = sadd.s32 4294967295, %s3816_s16   ;;  %s3816_s16 = sphi %s3890_s16, %s5051_s16   ;;  %s3812_s15 = sphi %s3888_s15, %s5053_s15   ;;  %s3808_s14 = sphi %s3886_s14, %s5055_s14   ;;  %s3804_s13 = sphi %s3884_s13, %s5054_s13  }
   0x8   : > { %s2568_s18 = sadd.s32 4294967294, %s3816_s16   ;;  %s3909_s19 = sadd.s32 1, %s3816_s16  }
   0x9   : > { %5007 = sst [smem:[#allocation20_spill]] %s3909_s19  ;;  %s240_s20 = sadd.s32 1, %s3812_s15 }
   0xa   : > { %s237_s21 = ssub.s32 %s3816_s16, %s3909_s19  ;;  %p250_p0 = scmp.ne.s32.totalorder %s3812_s15, %s3808_s14 }
   0xb   : > { %p238_p1 = scmp.eq.s32.totalorder %s237_s21, 0  ;;  %p251_p2 = scmp.eq.s32.totalorder %s3905_s17, 1 }
   0xc   : > { %p256_p3 = scmp.ne.s32.totalorder %s3808_s14, %s3804_s13  ;;  %p257_p4 = scmp.eq.s32.totalorder %s2568_s18, 1 }
   0xd   : > { %s3920_s22 = scalar_select %p238_p1, %s3812_s15, %s240_s20  }
   0xe   : > { %p3922_p5 = por %p251_p2, %p250_p0  ;;  %p3926_p6 = por %p257_p4, %p256_p3 }
   0xf   : > { %5008 = sst [smem:[#allocation21_spill]] %s3920_s22  ;;  %p2569_p7 = scmp.ge.s32.totalorder %s3816_s16, 1 }
  0x10   : > { %s5009_s23 = scalar_select %p3922_p5, 1, 0 }
  0x11   : > { %s5010_s24 = scalar_select %p3926_p6, 1, 0 }
  0x12   : > { %p290_p8 = scmp.lt.s32.totalorder %s3816_s16, 3  ;;  %p4997_p9 = scmp.eq.s32.totalorder %s3905_s17, 0 }
  0x13   : > { %5011 = sst [smem:[#allocation22_spill]] %s5010_s24  ;;  %s3818_s26 = smov [#allocation7]  }
  0x14   : > { %p3933_p10 = pnand %p2569_p7, %p290_p8  ;;  %s308_s27 = sshll.u32 %s3818_s26, 4  ;;  %s309_s27 = int_to_ptr.vmem [resolvable:$true] %s308_s27 }
  0x15   : > { %s3819_s29 = smov [#allocation10]   ;;  %s3658_s18 = scalar_lea.hbm %s4991_s5, 512 }
  0x16   : > { %s5012_s25 = scalar_select %p3933_p10, 1, 0 }
  0x17   : > { %p3422_p11 = pneg %p3933_p10  ;;  %s325_s30 = sshll.u32 %s3819_s29, 4  ;;  %s3945_s30 = int_to_ptr.vmem [resolvable:$true] %s325_s30 }
  0x18   : > { %p3659_p13 = scmp.ne.s32.totalorder %s4991_s5, %s3658_s18  ;;  %p3665_p3 = scmp.lt.u32.totalorder %s3658_s18, %s4991_s5 }
  0x19   : > { %p3941_p12 = pnand %p4997_p9, %p3422_p11 }
  0x1b   : > { %p3660_p0 = pneg %p3941_p12 }
  0x1d   : > { %p3661_p1 = pnand %p3660_p0, %p3659_p13 }
  0x1f   : > { %p3662_p2 = pneg %p3661_p1 }
  0x21   : > { %p3667_p4 = pnand %p3665_p3, %p3662_p2 }
  0x23   : > { %3670 = shalt.err (!%p3667_p4)
}
  0x24   : > { %s3671_s29 = scalar_lea.vmem %s309_s27, 512  ;;  %p3679_p9 = scmp.lt.s32.totalorder %s309_s27, %s309_s27 }
  0x25   : > { %p3672_p7 = scmp.ne.s32.totalorder %s309_s27, %s3671_s29  ;;  %p3680_p6 = scmp.lt.s32.totalorder %s3671_s29, %s3671_s29 }
  0x27   : > { %p3674_p8 = pnand %p3672_p7, %p3660_p0  ;;  %p3681_p5 = por %p3680_p6, %p3679_p9 }
  0x29   : > { %p3675_p11 = pneg %p3674_p8 }
  0x2b   : > { %p3682_p10 = pnand %p3681_p5, %p3675_p11 }
  0x2d   : > { %3685 = shalt.err (!%p3682_p10)
}
  0x2e   : > { %s3820_s11 = smov 256   ;;  %s3821_s12 = smov 16  }
  0x2f   : > { %3425 = dma.hbm_to_vmem [thread:$0]  (!%p3941_p12), %s4991_s5, 512, %s309_s27, [#allocation8], %s3820_s11, %s3820_s11, %s3821_s12  }
  0x30   : > { %s3686_s26 = scalar_lea.hbm %s4993_s7, 128 }
  0x31   : > { %p3687_p13 = scmp.ne.s32.totalorder %s4993_s7, %s3686_s26  ;;  %p3693_p9 = scmp.lt.u32.totalorder %s3686_s26, %s4993_s7 }
  0x33   : > { %p3689_p5 = pnand %p3687_p13, %p3660_p0 }
  0x35   : > { %p3690_p6 = pneg %p3689_p5 }
  0x37   : > { %p3695_p10 = pnand %p3693_p9, %p3690_p6 }
  0x39   : > { %3698 = shalt.err (!%p3695_p10)
}
  0x3a   : > { %s3699_s27 = scalar_lea.vmem %s3945_s30, 128  ;;  %p3707_p4 = scmp.lt.s32.totalorder %s3945_s30, %s3945_s30 }
  0x3b   : > { %p3700_p1 = scmp.ne.s32.totalorder %s3945_s30, %s3699_s27  ;;  %p3708_p7 = scmp.lt.s32.totalorder %s3699_s27, %s3699_s27 }
  0x3d   : > { %p3702_p2 = pnand %p3700_p1, %p3660_p0  ;;  %p3709_p8 = por %p3708_p7, %p3707_p4 }
  0x3f   : > { %p3703_p3 = pneg %p3702_p2 }
  0x41   : > { %p3710_p11 = pnand %p3709_p8, %p3703_p3 }
  0x43   : > { %3713 = shalt.err (!%p3710_p11)
}
  0x44   : > { %3428 = dma.hbm_to_vmem [thread:$0]  (!%p3941_p12), %s4993_s7, 128, %s3945_s30, [#allocation11]  }
  0x45   : > { %p5014_p13 = scmp.ne.s32.totalorder %s5012_s25, 0 }
  0x46   : > { %p5015_p5 = scmp.eq.s32.totalorder (!%p5014_p13), %s3905_s17, 0 }
  0x47   : > { %364 = sbr.rel (%p5014_p13) target bundleno = 2785 (0xae1), region = 56 }
  0x4e   : > { %3787 = dma.done.wait (%p5015_p5), [#allocation8], 512   ;;  %p5016_p0 = pmov %p5015_p5 }
  0x50   : > { %3789 = vsyncadd (%p5016_p0), [#allocation8], 4294966784  ;;  %p5017_p6 = pmov %p5016_p0 }
  0x51   : > { %p5018_p9 = pmov %p5016_p0 }
  0x52   : > { %3791 = dma.done.wait (%p5017_p6), [#allocation11], 128  }
  0x53   : > { %3793 = vsyncadd (%p5018_p9), [#allocation11], 4294967168  ;;  %p420_p10 = scmp.lt.s32.totalorder %s3905_s17, 1  ;;  %v5004_v0 = vmov 0.0   ;;  %v468_v1 = vld [vmem:[%s4989_s3 + $0x8] sm:$0xff]  ;;  %v470_v2 = vld [vmem:[%s4989_s3 + $0x18] sm:$0xff]  ;;  %v473_v31 = vlaneseq }
  0x54   : > { %551 = vmatprep.mubr.f32.mxu1 %v5004_v0  ;;  %913 = vmatprep.mubr.f32.mxu0 %v5004_v0  ;;  %v467_v3 = vld [vmem:[%s4989_s3] sm:$0xff]  ;;  %v3110_v4 = vpack.c.bf16 %v470_v2, %v468_v1  ;;  %v469_v5 = vld [vmem:[%s4989_s3 + $0x10] sm:$0xff]  ;;  %v559_v6 = vld [vmem:[%s4990_s4 + $0x8] sm:$0xff]  ;;  %vm483_vm0 = vcmask 130048   ;;  %v3823_v30 = vmov 0.0|0.0   ;;  %vm3824_vm1 = vmmov 0  }
  0x55   : > { %s4008_s24 = scalar_select %p420_p10, %s3905_s17, 1  ;;  %v3112_v7 = vpack.c.bf16 %v469_v5, %v467_v3  ;;  %v561_v8 = vld [vmem:[%s4990_s4 + $0x18] sm:$0xff]  ;;  %v558_v9 = vld [vmem:[%s4990_s4] sm:$0xff]  ;;  %v560_v10 = vld [vmem:[%s4990_s4 + $0x10] sm:$0xff]  ;;  %v474_v32 = vshrl.u32 %v473_v31, 7  ;;  %vm1113_vm2 = vcmask 523264  }
  0x56   : > { %3111 = vmatprep.subr.bf16.mxu1 %v3110_v4  ;;  %v3114_v11 = vpack.c.bf16 %v561_v8, %v559_v6  ;;  %v3116_v13 = vpack.c.bf16 %v560_v10, %v558_v9  ;;  %v563_v33 = vld [vmem:[#allocation10 + $0x1] ss:$4 sm:$0x3]  ;;  %vm4123_vm3 = vmpackc.low %vm1113_vm2, %vm1113_vm2  ;;  %s3825_s29 = smov 64   ;;  %vm1660_vm5 = vcmask 1048064   ;;  %p5048_p1 = scmp.ne.s32.totalorder %s5009_s23, 0 }
  0x57   : > { %s2578_s25 = sshll.u32 %s4008_s24, 3  ;;  %s2691_s28 = sshll.u32 %s4008_s24, 7  ;;  %3113 = vmatpush1.bf16.msra.mxu1 %v3112_v7  ;;  %v4101_v35 = vsub.s32 1, %v474_v32  ;;  %v4108_v38 = vsub.s32 0, %v474_v32 }
  0x58   : > { %s423_s27 = scalar_lea.vmem %s4986_s0, %s2578_s25  ;;  %s4044_s26 = scalar_lea.vmem %s4987_s1, %s2691_s28  ;;  %3115 = vmatprep.subr.bf16.mxu1 %v3114_v11 }
  0x59   : > { %v434_v12 = vld [vmem:[%s423_s27] sm:$0xff]  ;;  %v436_v15 = vld [vmem:[%s4044_s26 + $0x8] sm:$0xff]  ;;  %v437_v16 = vld [vmem:[%s4044_s26 + $0x10] sm:$0xff]  ;;  %v4106_v37 = vrot.slane %v563_v33, %v4101_v35  ;;  %v4111_v40 = vrot.slane %v563_v33, %v4108_v38  ;;  %s4273_s19 = scalar_lea.vmem %s4988_s2, %s2691_s28  ;;  %s4707_s24 = sand.u32 1, %s3808_s14  }
  0x5a   : > { %2583 = vmatmul.mubr.msk.f32.vlgmr.msra.gmra.mrb[0].mxu1 %vm483_vm0, %v434_v12  ;;  %v435_v14 = vld [vmem:[%s4044_s26] sm:$0xff]  ;;  %v438_v17 = vld [vmem:[%s4044_s26 + $0x18] sm:$0xff]  ;;  %v440_v19 = vld [vmem:[%s4044_s26 + $0x28] sm:$0xff]  ;;  %s2577_s28 = sshll.u32 %s4707_s24, 3  ;;  %s2688_s27 = sshll.u32 %s3905_s17, 7 }
  0x5b   : > { %3117 = vmatpush1.bf16.msra.mxu1 %v3116_v13  ;;  %687 = vmatprep.mubr.f32.mxu1 %v5004_v0  ;;  %v439_v18 = vld [vmem:[%s4044_s26 + $0x20] sm:$0xff]  ;;  %v441_v20 = vld [vmem:[%s4044_s26 + $0x30] sm:$0xff]  ;;  %v442_v21 = vld [vmem:[%s4044_s26 + $0x38] sm:$0xff]  ;;  %s4711_s30 = scalar_lea.vmem [#allocation13], %s2577_s28  ;;  %s4913_s11 = scalar_lea.hbm %s4996_s10, %s2688_s27 }
  0x5c   : > { %v443_v22 = vld [vmem:[%s4044_s26 + $0x40] sm:$0xff]  ;;  %v444_v23 = vld [vmem:[%s4044_s26 + $0x48] sm:$0xff]  ;;  %v445_v24 = vld [vmem:[%s4044_s26 + $0x50] sm:$0xff]  ;;  %3122 = vmatprep.subr.bf16.mxu1 %v3823_v30  ;;  %s2431_s15 = sshll.u32 %s4711_s30, 4  ;;  %s2404_s12 = scalar_lea.sflag [#allocation14], %s4707_s24  ;;  %s2432_s15 = int_to_ptr.vmem [resolvable:$true] %s2431_s15 }
  0x5d   : > { %v446_v25 = vld [vmem:[%s4044_s26 + $0x58] sm:$0xff]  ;;  %v447_v26 = vld [vmem:[%s4044_s26 + $0x60] sm:$0xff]  ;;  %v448_v27 = vld [vmem:[%s4044_s26 + $0x68] sm:$0xff]  ;;  %s3714_s22 = scalar_lea.vmem %s2432_s15, 128 }
  0x5e   : > { %2584 = vmatmul.mubr.msk.f32.vlgmr.msra.gmra.mrb[2].mxu1 %vm483_vm0, %v435_v14  ;;  %v449_v28 = vld [vmem:[%s4044_s26 + $0x70] sm:$0xff]  ;;  %v450_v29 = vld [vmem:[%s4044_s26 + $0x78] sm:$0xff]  ;;  %p3715_p12 = scmp.ne.s32.totalorder %s2432_s15, %s3714_s22 }
  0x5f   : > { %693 = vmatprep.mubr.f32.mxu1 %v5004_v0 }
  0x60   : > { %p3716_p2 = pnand %p3715_p12, %p5048_p1 }
  0x62   : > { %2585 = vmatmul.mubr.msk.f32.gmra.mrb[4].mxu1 %vm483_vm0, %v436_v15  ;;  %p3717_p3 = pneg %p3716_p2 }
  0x63   : > { %699 = vmatprep.mubr.f32.mxu1 %v5004_v0 }
  0x66   : > { %2586 = vmatmul.mubr.msk.f32.gmra.mrb[6].mxu1 %vm483_vm0, %v437_v16 }
  0x67   : > { %705 = vmatprep.mubr.f32.mxu1 %v5004_v0 }
  0x6a   : > { %2587 = vmatmul.mubr.msk.f32.gmra.mrb[8].mxu1 %vm483_vm0, %v438_v17 }
  0x6b   : > { %711 = vmatprep.mubr.f32.mxu1 %v5004_v0 }
  0x6e   : > { %2588 = vmatmul.mubr.msk.f32.gmra.mrb[10].mxu1 %vm483_vm0, %v439_v18 }
  0x6f   : > { %717 = vmatprep.mubr.f32.mxu1 %v5004_v0 }
  0x72   : > { %2589 = vmatmul.mubr.msk.f32.gmra.mrb[12].mxu1 %vm483_vm0, %v440_v19 }
  0x73   : > { %723 = vmatprep.mubr.f32.mxu1 %v5004_v0 }
  0x76   : > { %2590 = vmatmul.mubr.msk.f32.gmra.mrb[14].mxu1 %vm483_vm0, %v441_v20 }
  0x77   : > { %729 = vmatprep.mubr.f32.mxu1 %v5004_v0 }
  0x7a   : > { %2591 = vmatmul.mubr.msk.f32.gmra.mrb[16].mxu1 %vm483_vm0, %v442_v21 }
  0x7b   : > { %735 = vmatprep.mubr.f32.mxu1 %v5004_v0 }
  0x7e   : > { %2592 = vmatmul.mubr.msk.f32.gmra.mrb[18].mxu1 %vm483_vm0, %v443_v22 }
  0x7f   : > { %741 = vmatprep.mubr.f32.mxu1 %v5004_v0 }
  0x82   : > { %2593 = vmatmul.mubr.msk.f32.gmra.mrb[20].mxu1 %vm483_vm0, %v444_v23 }
  0x83   : > { %747 = vmatprep.mubr.f32.mxu1 %v5004_v0 }
  0x86   : > { %2594 = vmatmul.mubr.msk.f32.gmra.mrb[22].mxu1 %vm483_vm0, %v445_v24 }
  0x87   : > { %753 = vmatprep.mubr.f32.mxu1 %v5004_v0 }
  0x8a   : > { %2595 = vmatmul.mubr.msk.f32.gmra.mrb[24].mxu1 %vm483_vm0, %v446_v25 }
  0x8b   : > { %759 = vmatprep.mubr.f32.mxu1 %v5004_v0 }
  0x8e   : > { %2596 = vmatmul.mubr.msk.f32.gmra.mrb[26].mxu1 %vm483_vm0, %v447_v26 }
  0x8f   : > { %765 = vmatprep.mubr.f32.mxu1 %v5004_v0 }
  0x92   : > { %2597 = vmatmul.mubr.msk.f32.gmra.mrb[28].mxu1 %vm483_vm0, %v448_v27 }
  0x93   : > { %771 = vmatprep.mubr.f32.mxu1 %v5004_v0 }
  0x96   : > { %2598 = vmatmul.mubr.msk.f32.gmra.mrb[30].mxu1 %vm483_vm0, %v449_v28 }
  0x97   : > { %777 = vmatprep.mubr.f32.mxu1 %v5004_v0 }
  0x9a   : > { %2599 = vmatmul.mubr.msk.f32.gmra.mrb[32].mxu1 %vm483_vm0, %v450_v29 }
  0x9b   : > { %2862 = vmatprep.mubr.msk.f32.mxu1 %vm3824_vm1, %v5004_v0 }
 0x12d   : > { %v4099_v34 = vpop.f32.mrb[0].mxu1 }
 0x12e   : > { %v4103_v36 = vpop.f32.mrb[1].mxu1 }
 0x131   : > { %v689_v39 = vpop.f32.mrb[2].mxu1 }
 0x132   : > { %v691_v41 = vpop.f32.mrb[3].mxu1  ;;  %v690_v44 = vadd.f32 %v689_v39, %v4111_v40 }
 0x133   : > { %v4114_v42 = vadd.f32 %v691_v41, %v4106_v37 }
 0x135   : > { %v695_v43 = vpop.f32.mrb[4].mxu1 }
 0x136   : > { %v696_v45 = vadd.f32 %v695_v43, %v4111_v40  ;;  %v697_v46 = vpop.f32.mrb[5].mxu1 }
 0x137   : > { %v4119_v47 = vadd.f32 %v697_v46, %v4106_v37 }
 0x138   : > { %v3123_v49 = vpack.c.bf16 %v696_v45, %v690_v44  ;;  %v3482_v50 = vpack.i.bf16 %v696_v45, %v690_v44 }
 0x139   : > { %v701_v53 = vpop.f32.mrb[6].mxu1 }
 0x13a   : > { %v703_v54 = vpop.f32.mrb[7].mxu1  ;;  %3483 = vrot.lane.b32.xlu0 %v3482_v50, %s3825_s29  ;;  %3125 = vmatpush3.bf16.xpose.msk.msra.mxu1 %vm4123_vm3, %v3123_v49  ;;  %v702_v57 = vadd.f32 %v701_v53, %v4111_v40 }
 0x13b   : > { %v4135_v55 = vadd.f32 %v703_v54, %v4106_v37  ;;  %3126 = vmatprep.subr.bf16.mxu1 %v3823_v30 }
 0x13d   : > { %v707_v56 = vpop.f32.mrb[8].mxu1 }
 0x13e   : > { %v708_v58 = vadd.f32 %v707_v56, %v4111_v40  ;;  %v709_v59 = vpop.f32.mrb[9].mxu1 }
 0x13f   : > { %v4141_v60 = vadd.f32 %v709_v59, %v4106_v37 }
 0x140   : > { %v3487_v61 = vpack.i.bf16 %v708_v58, %v702_v57  ;;  %v3127_v62 = vpack.c.bf16 %v708_v58, %v702_v57 }
 0x141   : > { %v713_v2 = vpop.f32.mrb[10].mxu1 }
 0x142   : > { %v715_v3 = vpop.f32.mrb[11].mxu1  ;;  %3488 = vrot.lane.b32.xlu0 %v3487_v61, %s3825_s29  ;;  %3129 = vmatpush3.bf16.xpose.msk.msra.mxu1 %vm4123_vm3, %v3127_v62  ;;  %v714_v6 = vadd.f32 %v713_v2, %v4111_v40 }
 0x143   : > { %v4151_v4 = vadd.f32 %v715_v3, %v4106_v37  ;;  %3130 = vmatprep.subr.bf16.mxu1 %v3823_v30 }
 0x145   : > { %v719_v5 = vpop.f32.mrb[12].mxu1 }
 0x146   : > { %v720_v7 = vadd.f32 %v719_v5, %v4111_v40  ;;  %v721_v8 = vpop.f32.mrb[13].mxu1 }
 0x147   : > { %v4157_v9 = vadd.f32 %v721_v8, %v4106_v37  ;;  %v4218_v8 = vld [vmem:[#allocation10] ss:$4 sm:$0x3] }
 0x148   : > { %v3131_v10 = vpack.c.bf16 %v720_v7, %v714_v6  ;;  %v3492_v11 = vpack.i.bf16 %v720_v7, %v714_v6 }
 0x149   : > { %v725_v14 = vpop.f32.mrb[14].mxu1 }
 0x14a   : > { %v727_v15 = vpop.f32.mrb[15].mxu1  ;;  %3493 = vrot.lane.b32.xlu1 %v3492_v11, %s3825_s29  ;;  %3133 = vmatpush3.bf16.xpose.msk.msra.mxu1 %vm4123_vm3, %v3131_v10  ;;  %v726_v18 = vadd.f32 %v725_v14, %v4111_v40 }
 0x14b   : > { %v4167_v16 = vadd.f32 %v727_v15, %v4106_v37  ;;  %3134 = vmatprep.subr.bf16.mxu1 %v3823_v30 }
 0x14d   : > { %v731_v17 = vpop.f32.mrb[16].mxu1 }
 0x14e   : > { %v732_v19 = vadd.f32 %v731_v17, %v4111_v40  ;;  %v733_v20 = vpop.f32.mrb[17].mxu1 }
 0x14f   : > { %v4173_v21 = vadd.f32 %v733_v20, %v4106_v37 }
 0x150   : > { %v3497_v22 = vpack.i.bf16 %v732_v19, %v726_v18  ;;  %v3135_v23 = vpack.c.bf16 %v732_v19, %v726_v18  ;;  %v476_v18 = vrot.slane %v4218_v8, %v4108_v38 }
 0x151   : > { %v737_v26 = vpop.f32.mrb[18].mxu1 }
 0x152   : > { %v739_v27 = vpop.f32.mrb[19].mxu1  ;;  %3498 = vrot.lane.b32.xlu1 %v3497_v22, %s3825_s29  ;;  %3137 = vmatpush3.bf16.xpose.msk.msra.mxu1 %vm4123_vm3, %v3135_v23  ;;  %v738_v32 = vadd.f32 %v737_v26, %v4111_v40 }
 0x153   : > { %v4183_v28 = vadd.f32 %v739_v27, %v4106_v37  ;;  %3138 = vmatprep.subr.bf16.mxu1 %v3823_v30 }
 0x155   : > { %v743_v29 = vpop.f32.mrb[20].mxu1 }
 0x156   : > { %v744_v33 = vadd.f32 %v743_v29, %v4111_v40  ;;  %v745_v39 = vpop.f32.mrb[21].mxu1 }
 0x157   : > { %v4189_v41 = vadd.f32 %v745_v39, %v4106_v37 }
 0x158   : > { %v3502_v43 = vpack.i.bf16 %v744_v33, %v738_v32  ;;  %v3139_v44 = vpack.c.bf16 %v744_v33, %v738_v32  ;;  %v554_v32 = vadd.f32 %v4099_v34, %v476_v18 }
 0x159   : > { %v749_v49 = vpop.f32.mrb[22].mxu1 }
 0x15a   : > { %v751_v50 = vpop.f32.mrb[23].mxu1  ;;  %3503 = vrot.lane.b32.xlu0 %v3502_v43, %s3825_s29  ;;  %3141 = vmatpush3.bf16.xpose.msk.msra.mxu1 %vm4123_vm3, %v3139_v44  ;;  %v750_v56 = vadd.f32 %v749_v49, %v4111_v40 }
 0x15b   : > { %v4199_v53 = vadd.f32 %v751_v50, %v4106_v37  ;;  %3142 = vmatprep.subr.bf16.mxu1 %v3823_v30 }
 0x15d   : > { %v755_v54 = vpop.f32.mrb[24].mxu1 }
 0x15e   : > { %v756_v57 = vadd.f32 %v755_v54, %v4111_v40  ;;  %v757_v58 = vpop.f32.mrb[25].mxu1 }
 0x15f   : > { %v4205_v59 = vadd.f32 %v757_v58, %v4106_v37 }
 0x160   : > { %v3507_v61 = vpack.i.bf16 %v756_v57, %v750_v56  ;;  %v3143_v62 = vpack.c.bf16 %v756_v57, %v750_v56 }
 0x161   : > { %v761_v5 = vpop.f32.mrb[26].mxu1 }
 0x162   : > { %v763_v6 = vpop.f32.mrb[27].mxu1  ;;  %3508 = vrot.lane.b32.xlu1 %v3507_v61, %s3825_s29  ;;  %3145 = vmatpush3.bf16.xpose.msk.msra.mxu1 %vm4123_vm3, %v3143_v62  ;;  %v762_v11 = vadd.f32 %v761_v5, %v4111_v40 }
 0x163   : > { %v4215_v7 = vadd.f32 %v763_v6, %v4106_v37  ;;  %3146 = vmatprep.subr.bf16.mxu1 %v3823_v30 }
 0x165   : > { %v767_v10 = vpop.f32.mrb[28].mxu1 }
 0x166   : > { %v768_v14 = vadd.f32 %v767_v10, %v4111_v40  ;;  %v769_v15 = vpop.f32.mrb[29].mxu1 }
 0x167   : > { %v4223_v17 = vadd.f32 %v769_v15, %v4106_v37 }
 0x168   : > { %v3512_v19 = vpack.i.bf16 %v768_v14, %v762_v11  ;;  %v3147_v20 = vpack.c.bf16 %v768_v14, %v762_v11 }
 0x169   : > { %v773_v26 = vpop.f32.mrb[30].mxu1 }
 0x16a   : > { %v775_v27 = vpop.f32.mrb[31].mxu1  ;;  %3513 = vrot.lane.b32.xlu0 %v3512_v19, %s3825_s29  ;;  %3149 = vmatpush3.bf16.xpose.msk.msra.mxu1 %vm4123_vm3, %v3147_v20  ;;  %v774_v39 = vadd.f32 %v773_v26, %v4111_v40 }
 0x16b   : > { %v4235_v29 = vadd.f32 %v775_v27, %v4106_v37  ;;  %3150 = vmatprep.subr.bf16.mxu1 %v3823_v30 }
 0x16d   : > { %v779_v33 = vpop.f32.mrb[32].mxu1 }
 0x16e   : > { %v780_v43 = vadd.f32 %v779_v33, %v4111_v40  ;;  %v781_v44 = vpop.f32.mrb[33].mxu1  ;;  %1353 = vrot.lane.b32.xlu0 %v554_v32, %s3825_s29 }
 0x16f   : > { %v4243_v49 = vadd.f32 %v781_v44, %v4106_v37  ;;  %v787_v44 = vld [vmem:[#allocation7 + $0x18] sm:$0xff] }
 0x170   : > { %v3517_v50 = vpack.i.bf16 %v780_v43, %v774_v39  ;;  %v3151_v54 = vpack.c.bf16 %v780_v43, %v774_v39  ;;  %v785_v43 = vld [vmem:[#allocation7 + $0x8] sm:$0xff] }
 0x172   : > { %3518 = vrot.lane.b32.xlu1 %v3517_v50, %s3825_s29  ;;  %3153 = vmatpush3.bf16.xpose.msk.msra.mxu1 %vm4123_vm3, %v3151_v54  ;;  %v784_v50 = vld [vmem:[#allocation7] sm:$0xff]  ;;  %v3118_v54 = vpack.c.bf16 %v787_v44, %v785_v43 }
 0x173   : > { %3178 = vmatprep.subr.bf16.mxu1 %v3823_v30  ;;  %v457_v43 = vld [vmem:[%s4273_s19 + $0x30] sm:$0xff] }
 0x174   : > { %3119 = vmatprep.subr.bf16.mxu0 %v3118_v54  ;;  %v459_v54 = vld [vmem:[%s4273_s19 + $0x40] sm:$0xff] }
 0x179   : > { %2863 = vmatmul.mubr.msk.f32.vlgmr.msra.gmra.mrb[34].mxu1 %vm1113_vm2, %v554_v32 }
 0x17a   : > { %2932 = vmatprep.mubr.msk.f32.mxu1 %vm3824_vm1, %v5004_v0 }
 0x1ac   : > { %v3484_v34 = vpop.permute.xlu0 %3483 }
 0x1ad   : > { %v3486_v37 = vunpack.i.h.bf16 %v3484_v34  ;;  %v3485_v40 = vunpack.i.l.bf16 %v3484_v34  ;;  %v786_v34 = vld [vmem:[#allocation7 + $0x10] sm:$0xff] }
 0x1af   : > { %v3179_v58 = vpack.c.bf16 %v3486_v37, %v3485_v40  ;;  %v3120_v37 = vpack.c.bf16 %v786_v34, %v784_v50  ;;  %v451_v40 = vld [vmem:[%s4273_s19] sm:$0xff]  ;;  %v458_v50 = vld [vmem:[%s4273_s19 + $0x38] sm:$0xff]  ;;  %v460_v34 = vld [vmem:[%s4273_s19 + $0x48] sm:$0xff] }
 0x1b1   : > { %3181 = vmatpush3.bf16.xpose.msk.msra.mxu1 %vm4123_vm3, %v3179_v58  ;;  %3121 = vmatpush1.bf16.msra.mxu0 %v3120_v37  ;;  %v461_v37 = vld [vmem:[%s4273_s19 + $0x50] sm:$0xff] }
 0x1b2   : > { %3182 = vmatprep.subr.bf16.mxu1 %v3823_v30  ;;  %3154 = vmatprep.subr.bf16.mxu0 %v3823_v30 }
 0x1b4   : > { %v3489_v61 = vpop.permute.xlu0 %3488  ;;  %2600 = vmatmul.mubr.msk.f32.vlgmr.msra.gmra.mrb[0].mxu0 %vm483_vm0, %v451_v40  ;;  %v462_v40 = vld [vmem:[%s4273_s19 + $0x58] sm:$0xff] }
 0x1b5   : > { %v3491_v62 = vunpack.i.h.bf16 %v3489_v61  ;;  %v3490_v5 = vunpack.i.l.bf16 %v3489_v61  ;;  %919 = vmatprep.mubr.f32.mxu0 %v5004_v0 }
 0x1b7   : > { %v3183_v6 = vpack.c.bf16 %v3491_v62, %v3490_v5 }
 0x1b9   : > { %3185 = vmatpush3.bf16.xpose.msk.msra.mxu1 %vm4123_vm3, %v3183_v6  ;;  %v452_v6 = vld [vmem:[%s4273_s19 + $0x8] sm:$0xff] }
 0x1ba   : > { %3186 = vmatprep.subr.bf16.mxu1 %v3823_v30  ;;  %2601 = vmatmul.mubr.msk.f32.gmra.mrb[2].mxu0 %vm483_vm0, %v452_v6  ;;  %v1077_v6 = vand.u32 127, %v473_v31 }
 0x1bb   : > { %925 = vmatprep.mubr.f32.mxu0 %v5004_v0 }
 0x1bc   : > { %v3494_v10 = vpop.permute.xlu1 %3493  ;;  %vm1078_vm4 = vcmp.lt.s32.totalorder %v1077_v6, 8 }
 0x1bd   : > { %v3496_v11 = vunpack.i.h.bf16 %v3494_v10  ;;  %v3495_v14 = vunpack.i.l.bf16 %v3494_v10  ;;  %v453_v10 = vld [vmem:[%s4273_s19 + $0x10] sm:$0xff] }
 0x1be   : > { %2602 = vmatmul.mubr.msk.f32.gmra.mrb[4].mxu0 %vm483_vm0, %v453_v10  ;;  %v3826_v10 = vmov -1e+30  }
 0x1bf   : > { %v3187_v15 = vpack.c.bf16 %v3496_v11, %v3495_v14  ;;  %931 = vmatprep.mubr.f32.mxu0 %v5004_v0 }
 0x1c1   : > { %3189 = vmatpush3.bf16.xpose.msk.msra.mxu1 %vm4123_vm3, %v3187_v15 }
 0x1c2   : > { %3190 = vmatprep.subr.bf16.mxu1 %v3823_v30 }
 0x1c4   : > { %v3499_v18 = vpop.permute.xlu1 %3498 }
 0x1c5   : > { %v3501_v19 = vunpack.i.h.bf16 %v3499_v18  ;;  %v3500_v20 = vunpack.i.l.bf16 %v3499_v18 }
 0x1c7   : > { %v3191_v26 = vpack.c.bf16 %v3501_v19, %v3500_v20  ;;  %v454_v19 = vld [vmem:[%s4273_s19 + $0x18] sm:$0xff]  ;;  %v455_v20 = vld [vmem:[%s4273_s19 + $0x20] sm:$0xff] }
 0x1c8   : > { %2603 = vmatmul.mubr.msk.f32.gmra.mrb[6].mxu0 %vm483_vm0, %v454_v19  ;;  %v789_v19 = vld [vmem:[#allocation10 + $0x2] ss:$4 sm:$0x3] }
 0x1c9   : > { %3193 = vmatpush3.bf16.xpose.msk.msra.mxu1 %vm4123_vm3, %v3191_v26  ;;  %937 = vmatprep.mubr.f32.mxu0 %v5004_v0 }
 0x1ca   : > { %3194 = vmatprep.subr.bf16.mxu1 %v3823_v30 }
 0x1cc   : > { %v3504_v27 = vpop.permute.xlu0 %3503  ;;  %2604 = vmatmul.mubr.msk.f32.gmra.mrb[8].mxu0 %vm483_vm0, %v455_v20  ;;  %v4348_v20 = vrot.slane %v789_v19, %v4108_v38 }
 0x1cd   : > { %v3506_v32 = vunpack.i.h.bf16 %v3504_v27  ;;  %v3505_v33 = vunpack.i.l.bf16 %v3504_v27  ;;  %943 = vmatprep.mubr.f32.mxu0 %v5004_v0 }
 0x1cf   : > { %v3195_v39 = vpack.c.bf16 %v3506_v32, %v3505_v33 }
 0x1d1   : > { %3197 = vmatpush3.bf16.xpose.msk.msra.mxu1 %vm4123_vm3, %v3195_v39  ;;  %v456_v39 = vld [vmem:[%s4273_s19 + $0x28] sm:$0xff] }
 0x1d2   : > { %3198 = vmatprep.subr.bf16.mxu1 %v3823_v30  ;;  %2605 = vmatmul.mubr.msk.f32.gmra.mrb[10].mxu0 %vm483_vm0, %v456_v39 }
 0x1d3   : > { %949 = vmatprep.mubr.f32.mxu0 %v5004_v0 }
 0x1d4   : > { %v3509_v58 = vpop.permute.xlu1 %3508 }
 0x1d5   : > { %v3511_v61 = vunpack.i.h.bf16 %v3509_v58  ;;  %v3510_v62 = vunpack.i.l.bf16 %v3509_v58  ;;  %v463_v58 = vld [vmem:[%s4273_s19 + $0x60] sm:$0xff] }
 0x1d6   : > { %2606 = vmatmul.mubr.msk.f32.gmra.mrb[12].mxu0 %vm483_vm0, %v457_v43 }
 0x1d7   : > { %v3199_v5 = vpack.c.bf16 %v3511_v61, %v3510_v62  ;;  %955 = vmatprep.mubr.f32.mxu0 %v5004_v0  ;;  %v464_v61 = vld [vmem:[%s4273_s19 + $0x68] sm:$0xff]  ;;  %v465_v62 = vld [vmem:[%s4273_s19 + $0x70] sm:$0xff] }
 0x1d9   : > { %3201 = vmatpush3.bf16.xpose.msk.msra.mxu1 %vm4123_vm3, %v3199_v5  ;;  %v466_v5 = vld [vmem:[%s4273_s19 + $0x78] sm:$0xff] }
 0x1da   : > { %3202 = vmatprep.subr.bf16.mxu1 %v3823_v30  ;;  %2607 = vmatmul.mubr.msk.f32.gmra.mrb[14].mxu0 %vm483_vm0, %v458_v50 }
 0x1db   : > { %961 = vmatprep.mubr.f32.mxu0 %v5004_v0 }
 0x1dc   : > { %v3514_v11 = vpop.permute.xlu0 %3513 }
 0x1dd   : > { %v3516_v14 = vunpack.i.h.bf16 %v3514_v11  ;;  %v3515_v15 = vunpack.i.l.bf16 %v3514_v11  ;;  %v4341_v11 = vsel %vm1078_vm4, 0.0, %v3826_v10 }
 0x1de   : > { %2608 = vmatmul.mubr.msk.f32.gmra.mrb[16].mxu0 %vm483_vm0, %v459_v54 }
 0x1df   : > { %v3203_v18 = vpack.c.bf16 %v3516_v14, %v3515_v15  ;;  %967 = vmatprep.mubr.f32.mxu0 %v5004_v0 }
 0x1e0   : > { %v1354_v44 = vpop.permute.xlu0 %1353 }
 0x1e1   : > { %3205 = vmatpush3.bf16.xpose.msk.msra.mxu1 %vm4123_vm3, %v3203_v18 }
 0x1e2   : > { %3206 = vmatprep.subr.bf16.mxu1 %v3823_v30  ;;  %2609 = vmatmul.mubr.msk.f32.gmra.mrb[18].mxu0 %vm483_vm0, %v460_v34 }
 0x1e3   : > { %973 = vmatprep.mubr.f32.mxu0 %v5004_v0 }
 0x1e4   : > { %v3519_v26 = vpop.permute.xlu1 %3518 }
 0x1e5   : > { %v3521_v27 = vunpack.i.h.bf16 %v3519_v26  ;;  %v3520_v32 = vunpack.i.l.bf16 %v3519_v26  ;;  %v4351_v26 = vrot.slane %v789_v19, %v4101_v35 }
 0x1e6   : > { %2610 = vmatmul.mubr.msk.f32.gmra.mrb[20].mxu0 %vm483_vm0, %v461_v37 }
 0x1e7   : > { %v3207_v33 = vpack.c.bf16 %v3521_v27, %v3520_v32  ;;  %979 = vmatprep.mubr.f32.mxu0 %v5004_v0 }
 0x1e9   : > { %3209 = vmatpush3.bf16.xpose.msk.msra.mxu1 %vm4123_vm3, %v3207_v33 }
 0x1ea   : > { %3266 = vmatprep.subr.bf16.mxu1 %v3823_v30  ;;  %2611 = vmatmul.mubr.msk.f32.gmra.mrb[22].mxu0 %vm483_vm0, %v462_v40 }
 0x1eb   : > { %985 = vmatprep.mubr.f32.mxu0 %v5004_v0 }
 0x1ee   : > { %2612 = vmatmul.mubr.msk.f32.gmra.mrb[24].mxu0 %vm483_vm0, %v463_v58 }
 0x1ef   : > { %991 = vmatprep.mubr.f32.mxu0 %v5004_v0 }
 0x1f0   : > { %2933 = vmatmul.mubr.msk.f32.vlgmr.msra.gmra.mrb[36].mxu1 %vm1113_vm2, %v1354_v44 }
 0x1f1   : > { %3037 = vmatprep.mubr.msk.f32.mxu1 %vm3824_vm1, %v5004_v0 }
 0x1f2   : > { %2613 = vmatmul.mubr.msk.f32.gmra.mrb[26].mxu0 %vm483_vm0, %v464_v61 }
 0x1f3   : > { %997 = vmatprep.mubr.f32.mxu0 %v5004_v0 }
 0x1f6   : > { %2614 = vmatmul.mubr.msk.f32.gmra.mrb[28].mxu0 %vm483_vm0, %v465_v62 }
 0x1f7   : > { %1003 = vmatprep.mubr.f32.mxu0 %v5004_v0 }
 0x1fa   : > { %2615 = vmatmul.mubr.msk.f32.gmra.mrb[30].mxu0 %vm483_vm0, %v466_v5 }
 0x1fb   : > { %2897 = vmatprep.mubr.msk.f32.mxu0 %vm3824_vm1, %v5004_v0 }
 0x24c   : > { %v1231_v14 = vpop.f32.mrb[34].mxu1 }
 0x24d   : > { %v4344_v15 = vadd.f32 %v1231_v14, %v4341_v11  ;;  %v2864_v18 = vpop.f32.mrb[35].mxu1 }
 0x24f   : > { %1235 = vmax.xlane.f32.xlu1 %v4344_v15 }
 0x287   : > { %v915_v27 = vpop.f32.mrb[0].mxu0 }
 0x288   : > { %v917_v31 = vpop.f32.mrb[1].mxu0  ;;  %v916_v32 = vadd.f32 %v915_v27, %v4348_v20 }
 0x289   : > { %v4355_v33 = vadd.f32 %v917_v31, %v4351_v26 }
 0x28d   : > { %v921_v39 = vpop.f32.mrb[2].mxu0 }
 0x28e   : > { %v922_v43 = vadd.f32 %v921_v39, %v4348_v20  ;;  %v923_v44 = vpop.f32.mrb[3].mxu0 }
 0x28f   : > { %v4359_v50 = vadd.f32 %v923_v44, %v4351_v26 }
 0x290   : > { %v3522_v54 = vpack.i.bf16 %v922_v43, %v916_v32  ;;  %v3155_v34 = vpack.c.bf16 %v922_v43, %v916_v32 }
 0x291   : > { %v3267_v40 = vpack.c.bf16 %v4359_v50, %v4355_v33  ;;  %v927_v58 = vpop.f32.mrb[4].mxu0 }
 0x292   : > { %3156 = vmatpush3.bf16.msra.mxu0 %v3155_v34  ;;  %3523 = vrot.lane.b32.xlu1 %v3522_v54, %s3825_s29  ;;  %v929_v61 = vpop.f32.mrb[5].mxu0  ;;  %v4368_v62 = vadd.f32 %v927_v58, %v4348_v20 }
 0x293   : > { %3268 = vmatpush3.bf16.msra.mxu1 %v3267_v40  ;;  %3157 = vmatprep.subr.bf16.mxu0 %v3823_v30  ;;  %v4372_v5 = vadd.f32 %v929_v61, %v4351_v26 }
 0x294   : > { %3269 = vmatprep.subr.bf16.mxu1 %v3823_v30 }
 0x29b   : > { %v933_v6 = vpop.f32.mrb[6].mxu0 }
 0x29c   : > { %v4375_v10 = vadd.f32 %v933_v6, %v4348_v20  ;;  %v935_v14 = vpop.f32.mrb[7].mxu0 }
 0x29d   : > { %v4378_v18 = vadd.f32 %v935_v14, %v4351_v26 }
 0x29e   : > { %v3527_v19 = vpack.i.bf16 %v4375_v10, %v4368_v62  ;;  %v3158_v27 = vpack.c.bf16 %v4375_v10, %v4368_v62 }
 0x29f   : > { %v3270_v32 = vpack.c.bf16 %v4378_v18, %v4372_v5  ;;  %v939_v39 = vpop.f32.mrb[8].mxu0 }
 0x2a0   : > { %3159 = vmatpush3.bf16.msra.mxu0 %v3158_v27  ;;  %v941_v43 = vpop.f32.mrb[9].mxu0  ;;  %v4390_v44 = vadd.f32 %v939_v39, %v4348_v20 }
 0x2a1   : > { %3271 = vmatpush3.bf16.msra.mxu1 %v3270_v32  ;;  %3160 = vmatprep.subr.bf16.mxu0 %v3823_v30  ;;  %v4406_v27 = vadd.f32 %v941_v43, %v4351_v26 }
 0x2a2   : > { %3272 = vmatprep.subr.bf16.mxu1 %v3823_v30 }
 0x2a5   : > { %v945_v54 = vpop.f32.mrb[10].mxu0 }
 0x2a6   : > { %v4394_v34 = vadd.f32 %v945_v54, %v4348_v20  ;;  %v947_v32 = vpop.f32.mrb[11].mxu0 }
 0x2a7   : > { %v4409_v39 = vadd.f32 %v947_v32, %v4351_v26 }
 0x2a8   : > { %v3161_v58 = vpack.c.bf16 %v4394_v34, %v4390_v44 }
 0x2a9   : > { %v951_v37 = vpop.f32.mrb[12].mxu0  ;;  %v5045_v48 = vpack.i.bf16 %v4409_v39, %v4406_v27 }
 0x2aa   : > { %3162 = vmatpush3.bf16.msra.mxu0 %v3161_v58  ;;  %v3273_v58 = vpack.c.bf16 %v4409_v39, %v4406_v27 }
 0x2ab   : > { %3163 = vmatprep.subr.bf16.mxu0 %v3823_v30 }
 0x2ac   : > { %3274 = vmatpush3.bf16.msra.mxu1 %v3273_v58 }
 0x2ad   : > { %3275 = vmatprep.subr.bf16.mxu1 %v3823_v30 }
 0x2c3   : > { %v1503_v61 = vpop.f32.mrb[36].mxu1 }
 0x2c4   : > { %v4402_v6 = vadd.f32 %v1503_v61, %v4341_v11  ;;  %v2934_v14 = vpop.f32.mrb[37].mxu1  ;;  %v4416_v61 = vadd.f32 %v951_v37, %v4348_v20 }
 0x2c5   : > { %v953_v14 = vpop.f32.mrb[13].mxu0 }
 0x2c6   : > { %1507 = vmax.xlane.f32.xlu0 %v4402_v6  ;;  %v4420_v43 = vadd.f32 %v953_v14, %v4351_v26  ;;  %v957_v31 = vpop.f32.mrb[14].mxu0 }
 0x2c7   : > { %v4423_v32 = vadd.f32 %v957_v31, %v4348_v20  ;;  %v959_v56 = vpop.f32.mrb[15].mxu0 }
 0x2c8   : > { %v4426_v22 = vadd.f32 %v959_v56, %v4351_v26  ;;  %v963_v2 = vpop.f32.mrb[16].mxu0 }
 0x2c9   : > { %v3164_v45 = vpack.c.bf16 %v4423_v32, %v4416_v61  ;;  %v4434_v14 = vadd.f32 %v963_v2, %v4348_v20  ;;  %v965_v12 = vpop.f32.mrb[17].mxu0 }
 0x2ca   : > { %v3276_v56 = vpack.c.bf16 %v4426_v22, %v4420_v43  ;;  %v969_v63 = vpop.f32.mrb[18].mxu0  ;;  %v4450_v31 = vadd.f32 %v965_v12, %v4351_v26 }
 0x2cb   : > { %3165 = vmatpush3.bf16.msra.mxu0 %v3164_v45 }
 0x2cc   : > { %3277 = vmatpush3.bf16.msra.mxu1 %v3276_v56  ;;  %3166 = vmatprep.subr.bf16.mxu0 %v3823_v30 }
 0x2cd   : > { %3278 = vmatprep.subr.bf16.mxu1 %v3823_v30 }
 0x2dc   : > { %v1236_v54 = vpop.xlane.xlu1 %1235 }
 0x2dd   : > { %v1237_v58 = vsub.f32 %v4344_v15, %v1236_v54  ;;  %v4441_v15 = vadd.f32 %v969_v63, %v4348_v20 }
 0x2df   : > { %v1238_v51 = vmul.f32 1.442695, %v1237_v58  ;;  %v3167_v54 = vpack.c.bf16 %v4441_v15, %v4434_v14  ;;  %v971_v58 = vpop.f32.mrb[19].mxu0 }
 0x2e0   : > { %v4453_v63 = vadd.f32 %v971_v58, %v4351_v26  ;;  %v975_v45 = vpop.f32.mrb[20].mxu0 }
 0x2e1   : > { %3642 = vpow2.f32 %v1238_v51  ;;  %3168 = vmatpush3.bf16.msra.mxu0 %v3167_v54  ;;  %v976_v51 = vadd.f32 %v975_v45, %v4348_v20  ;;  %v977_v56 = vpop.f32.mrb[21].mxu0 }
 0x2e2   : > { %3169 = vmatprep.subr.bf16.mxu0 %v3823_v30  ;;  %v3279_v57 = vpack.c.bf16 %v4453_v63, %v4450_v31  ;;  %v4462_v12 = vadd.f32 %v977_v56, %v4351_v26  ;;  %v981_v23 = vpop.f32.mrb[22].mxu0 }
 0x2e3   : > { %v982_v54 = vadd.f32 %v981_v23, %v4348_v20  ;;  %v983_v58 = vpop.f32.mrb[23].mxu0 }
 0x2e4   : > { %3280 = vmatpush3.bf16.msra.mxu1 %v3279_v57  ;;  %v4466_v3 = vadd.f32 %v983_v58, %v4351_v26  ;;  %v987_v46 = vpop.f32.mrb[24].mxu0 }
 0x2e5   : > { %v3547_v45 = vpack.i.bf16 %v982_v54, %v976_v51  ;;  %v3170_v25 = vpack.c.bf16 %v982_v54, %v976_v51  ;;  %3281 = vmatprep.subr.bf16.mxu1 %v3823_v30  ;;  %v988_v24 = vadd.f32 %v987_v46, %v4348_v20  ;;  %v989_v13 = vpop.f32.mrb[25].mxu0 }
 0x2e6   : > { %v3282_v1 = vpack.c.bf16 %v4466_v3, %v4462_v12  ;;  %v4475_v23 = vadd.f32 %v989_v13, %v4351_v26  ;;  %v993_v57 = vpop.f32.mrb[26].mxu0 }
 0x2e7   : > { %3171 = vmatpush3.bf16.msra.mxu0 %v3170_v25  ;;  %v994_v52 = vadd.f32 %v993_v57, %v4348_v20  ;;  %v995_v51 = vpop.f32.mrb[27].mxu0 }
 0x2e8   : > { %3283 = vmatpush3.bf16.msra.mxu1 %v3282_v1  ;;  %v4479_v46 = vadd.f32 %v995_v51, %v4351_v26  ;;  %v999_v54 = vpop.f32.mrb[28].mxu0  ;;  %3172 = vmatprep.subr.bf16.mxu0 %v3823_v30 }
 0x2e9   : > { %v3552_v0 = vpack.i.bf16 %v994_v52, %v988_v24  ;;  %v3173_v56 = vpack.c.bf16 %v994_v52, %v988_v24  ;;  %3284 = vmatprep.subr.bf16.mxu1 %v3823_v30  ;;  %v1001_v1 = vpop.f32.mrb[29].mxu0  ;;  %v1000_v57 = vadd.f32 %v999_v54, %v4348_v20 }
 0x2ea   : > { %v3285_v25 = vpack.c.bf16 %v4479_v46, %v4475_v23  ;;  %v1005_v52 = vpop.f32.mrb[30].mxu0  ;;  %v4491_v51 = vadd.f32 %v1001_v1, %v4351_v26 }
 0x2eb   : > { %v3643_v58 = vpop.eup %3642  ;;  %3174 = vmatpush3.bf16.msra.mxu0 %v3173_v56  ;;  %v1007_v24 = vpop.f32.mrb[31].mxu0  ;;  %v1006_v2 = vadd.f32 %v1005_v52, %v4348_v20  ;;  %v5021_v20 = vpack.i.bf16 %v4394_v34, %v4390_v44 }
 0x2ec   : > { %1240 = vadd.xlane.f32.xlu0 %v3643_v58  ;;  %3286 = vmatpush3.bf16.msra.mxu1 %v3285_v25  ;;  %v4495_v13 = vadd.f32 %v1007_v24, %v4351_v26  ;;  %v5022_v26 = vpack.i.bf16 %v4423_v32, %v4416_v61 }
 0x2ed   : > { %3175 = vmatprep.subr.bf16.mxu0 %v3823_v30  ;;  %3287 = vmatprep.subr.bf16.mxu1 %v3823_v30  ;;  %v3557_v37 = vpack.i.bf16 %v1006_v2, %v1000_v57  ;;  %v3176_v56 = vpack.c.bf16 %v1006_v2, %v1000_v57 }
 0x2ee   : > { %v3637_v25 = vpack.i.bf16 %v4495_v13, %v4491_v51  ;;  %v3288_v40 = vpack.c.bf16 %v4495_v13, %v4491_v51 }
 0x2ef   : > { %3177 = vmatpush3.bf16.msra.mxu0 %v3176_v56 }
 0x2f0   : > { %3289 = vmatpush3.bf16.msra.mxu1 %v3288_v40  ;;  %3210 = vmatprep.subr.bf16.mxu0 %v3823_v30  ;;  %v5023_v40 = vpack.i.bf16 %v4441_v15, %v4434_v14 }
 0x2f1   : > { %3290 = vmatprep.subr.bf16.mxu1 %v3823_v30 }
 0x302   : > { %3528 = vrot.lane.b32.xlu0 %v3527_v19, %s3825_s29 }
 0x304   : > { %v3524_v61 = vpop.permute.xlu1 %3523 }
 0x305   : > { %v3526_v15 = vunpack.i.h.bf16 %v3524_v61  ;;  %v3525_v2 = vunpack.i.l.bf16 %v3524_v61 }
 0x306   : > { %3533 = vrot.lane.b32.xlu0 %v5021_v20, %s3825_s29 }
 0x30a   : > { %3538 = vrot.lane.b32.xlu0 %v5022_v26, %s3825_s29  ;;  %v5024_v26 = vmov 0.0  }
 0x30e   : > { %3543 = vrot.lane.b32.xlu0 %v5023_v40, %s3825_s29 }
 0x312   : > { %3548 = vrot.lane.b32.xlu0 %v3547_v45, %s3825_s29 }
 0x316   : > { %3553 = vrot.lane.b32.xlu0 %v3552_v0, %s3825_s29 }
 0x31a   : > { %3558 = vrot.lane.b32.xlu0 %v3557_v37, %s3825_s29  ;;  %v3211_v37 = vpack.c.bf16 %v3526_v15, %v3525_v2 }
 0x353   : > { %v1508_v62 = vpop.xlane.xlu0 %1507 }
 0x354   : > { %v1509_v10 = vsub.f32 %v4402_v6, %v1508_v62 }
 0x356   : > { %v1510_v19 = vmul.f32 1.442695, %v1509_v10 }
 0x358   : > { %3644 = vpow2.f32 %v1510_v19 }
 0x362   : > { %v4523_v44 = vpop.eup %3644 }
 0x363   : > { %1512 = vadd.xlane.f32.xlu1 %v4523_v44 }
 0x379   : > { %v1241_v34 = vpop.xlane.xlu0 %1240 }
 0x37a   : > { %3646 = vrcp.f32 %v1241_v34 }
 0x37d   : > { %v3529_v0 = vpop.permute.xlu0 %3528 }
 0x37e   : > { %v3531_v1 = vunpack.i.h.bf16 %v3529_v0  ;;  %v3530_v57 = vunpack.i.l.bf16 %v3529_v0 }
 0x380   : > { %v3214_v24 = vpack.c.bf16 %v3531_v1, %v3530_v57 }
 0x381   : > { %v3534_v52 = vpop.permute.xlu0 %3533 }
 0x382   : > { %v3536_v56 = vunpack.i.h.bf16 %v3534_v52  ;;  %v3535_v20 = vunpack.i.l.bf16 %v3534_v52 }
 0x384   : > { %v3647_v32 = vpop.eup %3646  ;;  %v3217_v62 = vpack.c.bf16 %v3536_v56, %v3535_v20 }
 0x385   : > { %v1243_v14 = vmul.f32 %v3647_v32, %v1241_v34  ;;  %v3539_v40 = vpop.permute.xlu0 %3538 }
 0x386   : > { %v3541_v10 = vunpack.i.h.bf16 %v3539_v40  ;;  %v3540_v19 = vunpack.i.l.bf16 %v3539_v40 }
 0x387   : > { %v1244_v45 = vsub.f32 2.0, %v1243_v14 }
 0x388   : > { %v3220_v34 = vpack.c.bf16 %v3541_v10, %v3540_v19 }
 0x389   : > { %v1245_v54 = vmul.f32 %v3647_v32, %v1244_v45 }
 0x38b   : > { %v4526_v6 = vmul.f32 %v3643_v58, %v1245_v54  ;;  %v3544_v58 = vpop.permute.xlu0 %3543 }
 0x38c   : > { %v3546_v61 = vunpack.i.h.bf16 %v3544_v58  ;;  %v3545_v32 = vunpack.i.l.bf16 %v3544_v58 }
 0x38d   : > { %2898 = vmatmul.mubr.f32.vlgmr.msra.gmra.mrb[32].mxu0 %v4526_v6 }
 0x38e   : > { %3212 = vmatpush3.bf16.msra.mxu0 %v3211_v37  ;;  %2967 = vmatprep.mubr.msk.f32.mxu0 %vm3824_vm1, %v5024_v26  ;;  %v3223_v15 = vpack.c.bf16 %v3546_v61, %v3545_v32  ;;  %v5025_v61 = vpack.c.bf16 %v4119_v47, %v4114_v42  ;;  %v5026_v32 = vpack.c.bf16 %v4141_v60, %v4135_v55 }
 0x38f   : > { %3213 = vmatprep.subr.bf16.mxu0 %v3823_v30  ;;  %v3549_v14 = vpop.permute.xlu0 %3548 }
 0x390   : > { %v3551_v2 = vunpack.i.h.bf16 %v3549_v14  ;;  %v3550_v45 = vunpack.i.l.bf16 %v3549_v14  ;;  %v5028_v14 = vpack.c.bf16 %v4173_v21, %v4167_v16 }
 0x392   : > { %3215 = vmatpush3.bf16.msra.mxu0 %v3214_v24  ;;  %v3226_v54 = vpack.c.bf16 %v3551_v2, %v3550_v45  ;;  %v5030_v2 = vpack.c.bf16 %v4205_v59, %v4199_v53  ;;  %v5031_v45 = vpack.c.bf16 %v4223_v17, %v4215_v7 }
 0x393   : > { %3216 = vmatprep.subr.bf16.mxu0 %v3823_v30  ;;  %v3554_v0 = vpop.permute.xlu0 %3553 }
 0x394   : > { %v3556_v37 = vunpack.i.h.bf16 %v3554_v0  ;;  %v3555_v1 = vunpack.i.l.bf16 %v3554_v0  ;;  %v5032_v0 = vpack.c.bf16 %v4243_v49, %v4235_v29 }
 0x396   : > { %3218 = vmatpush3.bf16.msra.mxu0 %v3217_v62  ;;  %v3229_v52 = vpack.c.bf16 %v3556_v37, %v3555_v1 }
 0x397   : > { %3219 = vmatprep.subr.bf16.mxu0 %v3823_v30  ;;  %v3559_v57 = vpop.permute.xlu0 %3558 }
 0x398   : > { %v3561_v24 = vunpack.i.h.bf16 %v3559_v57  ;;  %v3560_v56 = vunpack.i.l.bf16 %v3559_v57 }
 0x39a   : > { %3221 = vmatpush3.bf16.msra.mxu0 %v3220_v34  ;;  %v3232_v20 = vpack.c.bf16 %v3561_v24, %v3560_v56 }
 0x39b   : > { %3222 = vmatprep.subr.bf16.mxu0 %v3823_v30 }
 0x39e   : > { %3224 = vmatpush3.bf16.msra.mxu0 %v3223_v15  ;;  %v5029_v15 = vpack.c.bf16 %v4189_v41, %v4183_v28 }
 0x39f   : > { %3225 = vmatprep.subr.bf16.mxu0 %v3823_v30 }
 0x3a2   : > { %3227 = vmatpush3.bf16.msra.mxu0 %v3226_v54  ;;  %v480_v54 = vrot.slane %v4218_v8, %v4101_v35 }
 0x3a3   : > { %3228 = vmatprep.subr.bf16.mxu0 %v3823_v30 }
 0x3a4   : > { %v556_v37 = vadd.f32 %v4103_v36, %v480_v54  ;;  %v5033_v36 = vpack.i.bf16 %v4173_v21, %v4167_v16  ;;  %v5036_v16 = vpack.i.bf16 %v4157_v9, %v4151_v4  ;;  %v5037_v21 = vpack.i.bf16 %v4189_v41, %v4183_v28 }
 0x3a6   : > { %3230 = vmatpush3.bf16.msra.mxu0 %v3229_v52 }
 0x3a7   : > { %3231 = vmatprep.subr.bf16.mxu0 %v3823_v30 }
 0x3aa   : > { %3233 = vmatpush3.bf16.msra.mxu0 %v3232_v20 }
 0x3ab   : > { %3234 = vmatprep.subr.bf16.mxu0 %v3823_v30 }
 0x3f0   : > { %v1513_v40 = vpop.xlane.xlu1 %1512 }
 0x3f1   : > { %3648 = vrcp.f32 %v1513_v40 }
 0x3fb   : > { %v3649_v62 = vpop.eup %3648 }
 0x3fc   : > { %v1515_v10 = vmul.f32 %v3649_v62, %v1513_v40 }
 0x3fe   : > { %v1516_v19 = vsub.f32 2.0, %v1515_v10 }
 0x400   : > { %v1517_v58 = vmul.f32 %v3649_v62, %v1516_v19 }
 0x402   : > { %v1518_v34 = vmul.f32 %v4523_v44, %v1517_v58  ;;  %v5027_v44 = vpack.c.bf16 %v4157_v9, %v4151_v4  ;;  %v5034_v58 = vpack.i.bf16 %v4119_v47, %v4114_v42  ;;  %v5038_v42 = vpack.i.bf16 %v4205_v59, %v4199_v53 }
 0x403   : > { %v5039_v47 = vpack.i.bf16 %v4223_v17, %v4215_v7  ;;  %v5042_v4 = vpack.i.bf16 %v4426_v22, %v4420_v43  ;;  %v5043_v9 = vpack.i.bf16 %v4466_v3, %v4462_v12 }
 0x404   : > { %2968 = vmatmul.mubr.f32.vlgmr.msra.gmra.mrb[34].mxu0 %v1518_v34 }
 0x405   : > { %3237 = vmatpush3.bf16.xpose.msk.msra.mxu0 %vm4123_vm3, %v5025_v61  ;;  %3002 = vmatprep.mubr.msk.f32.mxu0 %vm3824_vm1, %v5024_v26  ;;  %v5035_v61 = vpack.i.bf16 %v4141_v60, %v4135_v55  ;;  %v5040_v55 = vpack.i.bf16 %v4243_v49, %v4235_v29  ;;  %v5041_v60 = vpack.i.bf16 %v4378_v18, %v4372_v5 }
 0x406   : > { %3238 = vmatprep.subr.bf16.mxu0 %v3823_v30  ;;  %v1520_v5 = vadd.f32 %v1518_v34, %v4526_v6 }
 0x40d   : > { %3241 = vmatpush3.bf16.xpose.msk.msra.mxu0 %vm4123_vm3, %v5026_v32 }
 0x40e   : > { %3242 = vmatprep.subr.bf16.mxu0 %v3823_v30 }
 0x415   : > { %3245 = vmatpush3.bf16.xpose.msk.msra.mxu0 %vm4123_vm3, %v5027_v44 }
 0x416   : > { %3246 = vmatprep.subr.bf16.mxu0 %v3823_v30 }
 0x41d   : > { %3249 = vmatpush3.bf16.xpose.msk.msra.mxu0 %vm4123_vm3, %v5028_v14 }
 0x41e   : > { %3250 = vmatprep.subr.bf16.mxu0 %v3823_v30 }
 0x425   : > { %3253 = vmatpush3.bf16.xpose.msk.msra.mxu0 %vm4123_vm3, %v5029_v15 }
 0x426   : > { %3254 = vmatprep.subr.bf16.mxu0 %v3823_v30 }
 0x42d   : > { %3257 = vmatpush3.bf16.xpose.msk.msra.mxu0 %vm4123_vm3, %v5030_v2 }
 0x42e   : > { %3258 = vmatprep.subr.bf16.mxu0 %v3823_v30 }
 0x435   : > { %3261 = vmatpush3.bf16.xpose.msk.msra.mxu0 %vm4123_vm3, %v5031_v45 }
 0x436   : > { %3262 = vmatprep.subr.bf16.mxu0 %v3823_v30 }
 0x43d   : > { %3265 = vmatpush3.bf16.xpose.msk.msra.mxu0 %vm4123_vm3, %v5032_v0 }
 0x43e   : > { %3322 = vmatprep.subr.bf16.mxu0 %v3823_v30 }
 0x444   : > { %3003 = vmatmul.mubr.msk.f32.vlgmr.msra.gmra.mrb[36].mxu0 %vm1113_vm2, %v556_v37 }
 0x445   : > { %3107 = vmatprep.mubr.msk.f32.mxu0 %vm3824_vm1, %v5024_v26 }
 0x460   : > { %v1314_v1 = vpop.f32.mrb[32].mxu0 }
 0x461   : > { %1318 = vst.msk [vmem:[#allocation5] sm:$0xff] %vm1113_vm2, %v1314_v1  ;;  %v2899_v57 = vpop.f32.mrb[33].mxu0 }
 0x4d7   : > { %v4597_v52 = vpop.f32.mrb[34].mxu0 }
 0x4d8   : > { %v2969_v24 = vpop.f32.mrb[35].mxu0 }
 0x517   : > { %v1812_v56 = vpop.f32.mrb[36].mxu0 }
 0x518   : > { %v1813_v20 = vadd.f32 %v1812_v56, %v4341_v11  ;;  %v3004_v8 = vpop.f32.mrb[37].mxu0 }
 0x51a   : > { %1816 = vmax.xlane.f32.xlu0 %v1813_v20 }
 0x530   : > { %3578 = vrot.lane.b32.xlu0 %v5033_v36, %s3825_s29 }
 0x5a7   : > { %v1817_v40 = vpop.xlane.xlu0 %1816 }
 0x5a8   : > { %v1818_v62 = vsub.f32 %v1813_v20, %v1817_v40 }
 0x5aa   : > { %v1819_v10 = vmul.f32 1.442695, %v1818_v62 }
 0x5ab   : > { %v3579_v2 = vpop.permute.xlu0 %3578 }
 0x5ac   : > { %3650 = vpow2.f32 %v1819_v10  ;;  %v3580_v45 = vunpack.i.l.bf16 %v3579_v2 }
 0x5b6   : > { %v3651_v19 = vpop.eup %3650 }
 0x5b7   : > { %1821 = vadd.xlane.f32.xlu1 %v3651_v19 }
 0x5c8   : > { %3563 = vrot.lane.b32.xlu1 %v5034_v58, %s3825_s29 }
 0x5cc   : > { %3568 = vrot.lane.b32.xlu1 %v5035_v61, %s3825_s29 }
 0x5d0   : > { %3573 = vrot.lane.b32.xlu1 %v5036_v16, %s3825_s29 }
 0x5d4   : > { %3583 = vrot.lane.b32.xlu1 %v5037_v21, %s3825_s29 }
 0x5d8   : > { %3588 = vrot.lane.b32.xlu1 %v5038_v42, %s3825_s29 }
 0x5dc   : > { %3593 = vrot.lane.b32.xlu1 %v5039_v47, %s3825_s29 }
 0x5e0   : > { %3598 = vrot.lane.b32.xlu1 %v5040_v55, %s3825_s29 }
 0x5e4   : > { %1936 = vrot.lane.b32.xlu1 %v556_v37, %s3825_s29 }
 0x5e8   : > { %3608 = vrot.lane.b32.xlu1 %v5041_v60, %s3825_s29 }
 0x5ec   : > { %3618 = vrot.lane.b32.xlu1 %v5042_v4, %s3825_s29 }
 0x5f0   : > { %3628 = vrot.lane.b32.xlu1 %v5043_v9, %s3825_s29  ;;  %v5044_v9 = vpack.i.bf16 %v4359_v50, %v4355_v33 }
 0x644   : > { %v1822_v28 = vpop.xlane.xlu1 %1821 }
 0x645   : > { %3652 = vrcp.f32 %v1822_v28 }
 0x648   : > { %v3564_v59 = vpop.permute.xlu1 %3563 }
 0x649   : > { %v3566_v17 = vunpack.i.h.bf16 %v3564_v59  ;;  %v3565_v29 = vunpack.i.l.bf16 %v3564_v59 }
 0x64b   : > { %v3291_v32 = vpack.c.bf16 %v3566_v17, %v3565_v29 }
 0x64c   : > { %v3569_v43 = vpop.permute.xlu1 %3568 }
 0x64d   : > { %v3571_v3 = vunpack.i.h.bf16 %v3569_v43  ;;  %v3570_v12 = vunpack.i.l.bf16 %v3569_v43 }
 0x64f   : > { %v3653_v41 = vpop.eup %3652  ;;  %v3295_v44 = vpack.c.bf16 %v3571_v3, %v3570_v12 }
 0x650   : > { %v1824_v53 = vmul.f32 %v3653_v41, %v1822_v28  ;;  %v3574_v14 = vpop.permute.xlu1 %3573  ;;  %v5046_v28 = vpack.i.bf16 %v4453_v63, %v4450_v31 }
 0x651   : > { %v3576_v6 = vunpack.i.h.bf16 %v3574_v14  ;;  %v3575_v34 = vunpack.i.l.bf16 %v3574_v14 }
 0x652   : > { %v1825_v7 = vsub.f32 2.0, %v1824_v53 }
 0x653   : > { %v3299_v15 = vpack.c.bf16 %v3576_v6, %v3575_v34 }
 0x654   : > { %v1826_v49 = vmul.f32 %v3653_v41, %v1825_v7  ;;  %v3584_v54 = vpop.permute.xlu1 %3583 }
 0x655   : > { %v3586_v37 = vunpack.i.h.bf16 %v3584_v54  ;;  %v3585_v1 = vunpack.i.l.bf16 %v3584_v54 }
 0x656   : > { %v1827_v18 = vmul.f32 %v3651_v19, %v1826_v49 }
 0x657   : > { %v3307_v57 = vpack.c.bf16 %v3586_v37, %v3585_v1 }
 0x658   : > { %v4646_v22 = vadd.f32 %v1827_v18, %v1520_v5  ;;  %3038 = vmatmul.mubr.f32.vlgmr.msra.gmra.mrb[38].mxu1 %v1827_v18  ;;  %v3589_v24 = vpop.permute.xlu1 %3588 }
 0x659   : > { %3293 = vmatpush3.bf16.xpose.msk.msra.mxu1 %vm4123_vm3, %v3291_v32  ;;  %3072 = vmatprep.mubr.msk.f32.mxu1 %vm3824_vm1, %v5024_v26  ;;  %v3581_v26 = vunpack.i.h.bf16 %v3579_v2  ;;  %v3591_v56 = vunpack.i.h.bf16 %v3589_v24  ;;  %v3590_v20 = vunpack.i.l.bf16 %v3589_v24 }
 0x65a   : > { %3294 = vmatprep.subr.bf16.mxu1 %v3823_v30 }
 0x65b   : > { %v3303_v0 = vpack.c.bf16 %v3581_v26, %v3580_v45  ;;  %v3311_v8 = vpack.c.bf16 %v3591_v56, %v3590_v20 }
 0x65c   : > { %v3594_v36 = vpop.permute.xlu1 %3593 }
 0x65d   : > { %v3596_v40 = vunpack.i.h.bf16 %v3594_v36  ;;  %v3595_v62 = vunpack.i.l.bf16 %v3594_v36 }
 0x65f   : > { %v3315_v10 = vpack.c.bf16 %v3596_v40, %v3595_v62  ;;  %v2247_v62 = vld [vmem:[%s4992_s6 + $0x8] sm:$0xff] }
 0x660   : > { %v3599_v19 = vpop.permute.xlu1 %3598 }
 0x661   : > { %3297 = vmatpush3.bf16.xpose.msk.msra.mxu1 %vm4123_vm3, %v3295_v44  ;;  %v3601_v58 = vunpack.i.h.bf16 %v3599_v19  ;;  %v3600_v61 = vunpack.i.l.bf16 %v3599_v19  ;;  %v2246_v19 = vld [vmem:[%s4992_s6] sm:$0xff] }
 0x662   : > { %3298 = vmatprep.subr.bf16.mxu1 %v3823_v30 }
 0x663   : > { %v3319_v16 = vpack.c.bf16 %v3601_v58, %v3600_v61  ;;  %v2251_v61 = vld [vmem:[%s4992_s6 + $0x28] sm:$0xff] }
 0x664   : > { %v1937_v21 = vpop.permute.xlu1 %1936 }
 0x668   : > { %v3609_v33 = vpop.permute.xlu1 %3608 }
 0x669   : > { %3301 = vmatpush3.bf16.xpose.msk.msra.mxu1 %vm4123_vm3, %v3299_v15  ;;  %v3611_v27 = vunpack.i.h.bf16 %v3609_v33  ;;  %v3610_v39 = vunpack.i.l.bf16 %v3609_v33 }
 0x66a   : > { %3302 = vmatprep.subr.bf16.mxu1 %v3823_v30 }
 0x66b   : > { %v3326_v31 = vpack.c.bf16 %v3611_v27, %v3610_v39  ;;  %v2265_v27 = vld [vmem:[%s4992_s6 + $0x98] sm:$0xff] }
 0x671   : > { %3305 = vmatpush3.bf16.xpose.msk.msra.mxu1 %vm4123_vm3, %v3303_v0 }
 0x672   : > { %3306 = vmatprep.subr.bf16.mxu1 %v3823_v30 }
 0x679   : > { %3309 = vmatpush3.bf16.xpose.msk.msra.mxu1 %vm4123_vm3, %v3307_v57 }
 0x67a   : > { %3310 = vmatprep.subr.bf16.mxu1 %v3823_v30 }
 0x681   : > { %3313 = vmatpush3.bf16.xpose.msk.msra.mxu1 %vm4123_vm3, %v3311_v8 }
 0x682   : > { %3314 = vmatprep.subr.bf16.mxu1 %v3823_v30 }
 0x689   : > { %3317 = vmatpush3.bf16.xpose.msk.msra.mxu1 %vm4123_vm3, %v3315_v10  ;;  %v2249_v10 = vld [vmem:[%s4992_s6 + $0x18] sm:$0xff] }
 0x68a   : > { %3318 = vmatprep.subr.bf16.mxu1 %v3823_v30  ;;  %v3346_v58 = vpack.c.bf16 %v2249_v10, %v2247_v62  ;;  %v2286_v10 = vld [vmem:[%s4992_s6 + $0x140] sm:$0xff] }
 0x691   : > { %3321 = vmatpush3.bf16.xpose.msk.msra.mxu1 %vm4123_vm3, %v3319_v16  ;;  %v2253_v16 = vld [vmem:[%s4992_s6 + $0x38] sm:$0xff] }
 0x698   : > { %3073 = vmatmul.mubr.msk.f32.vlgmr.msra.gmra.mrb[40].mxu1 %vm1113_vm2, %v1937_v21 }
 0x72b   : > { %v1897_v42 = vpop.f32.mrb[38].mxu1 }
 0x72c   : > { %1901 = vst.msk [vmem:[#allocation5 + $0x8] sm:$0xff] %vm1113_vm2, %v1897_v42  ;;  %v3039_v47 = vpop.f32.mrb[39].mxu1  ;;  %v3350_v42 = vpack.c.bf16 %v2253_v16, %v2251_v61 }
 0x72d   : > { %v2250_v47 = vld [vmem:[%s4992_s6 + $0x20] sm:$0xff] }
 0x76b   : > { %v2086_v55 = vpop.f32.mrb[40].mxu1 }
 0x76c   : > { %v2087_v60 = vadd.f32 %v2086_v55, %v4341_v11  ;;  %v3074_v4 = vpop.f32.mrb[41].mxu1  ;;  %v5047_v11 = vpack.i.bf16 %v4479_v46, %v4475_v23  ;;  %v3619_v23 = vpop.permute.xlu1 %3618  ;;  %v2252_v55 = vld [vmem:[%s4992_s6 + $0x30] sm:$0xff] }
 0x76d   : > { %v3621_v18 = vunpack.i.h.bf16 %v3619_v23  ;;  %v3620_v32 = vunpack.i.l.bf16 %v3619_v23  ;;  %v2257_v4 = vld [vmem:[%s4992_s6 + $0x58] sm:$0xff] }
 0x76e   : > { %2090 = vmax.xlane.f32.xlu0 %v2087_v60 }
 0x76f   : > { %v3332_v12 = vpack.c.bf16 %v3621_v18, %v3620_v32  ;;  %v2266_v18 = vld [vmem:[%s4992_s6 + $0xa0] sm:$0xff]  ;;  %v2268_v32 = vld [vmem:[%s4992_s6 + $0xb0] sm:$0xff] }
 0x770   : > { %v3629_v6 = vpop.permute.xlu1 %3628 }
 0x771   : > { %v3631_v34 = vunpack.i.h.bf16 %v3629_v6  ;;  %v3630_v15 = vunpack.i.l.bf16 %v3629_v6  ;;  %v2272_v6 = vld [vmem:[%s4992_s6 + $0xd0] sm:$0xff] }
 0x773   : > { %v3338_v45 = vpack.c.bf16 %v3631_v34, %v3630_v15  ;;  %v2275_v34 = vld [vmem:[%s4992_s6 + $0xe8] sm:$0xff]  ;;  %v2277_v15 = vld [vmem:[%s4992_s6 + $0xf8] sm:$0xff] }
 0x784   : > { %3603 = vrot.lane.b32.xlu0 %v5044_v9, %s3825_s29  ;;  %v3352_v9 = vpack.c.bf16 %v2252_v55, %v2250_v47  ;;  %v2295_v47 = vld [vmem:[%s4992_s6 + $0x188] sm:$0xff]  ;;  %v2297_v55 = vld [vmem:[%s4992_s6 + $0x198] sm:$0xff] }
 0x788   : > { %3613 = vrot.lane.b32.xlu0 %v5045_v48, %s3825_s29 }
 0x78c   : > { %3623 = vrot.lane.b32.xlu0 %v5046_v28, %s3825_s29  ;;  %v2254_v28 = vld [vmem:[%s4992_s6 + $0x40] sm:$0xff] }
 0x790   : > { %3633 = vrot.lane.b32.xlu0 %v5047_v11, %s3825_s29  ;;  %v2256_v11 = vld [vmem:[%s4992_s6 + $0x50] sm:$0xff] }
 0x7fb   : > { %v2091_v41 = vpop.xlane.xlu0 %2090 }
 0x7fc   : > { %v2092_v53 = vsub.f32 %v2087_v60, %v2091_v41  ;;  %v2255_v60 = vld [vmem:[%s4992_s6 + $0x48] sm:$0xff] }
 0x7fd   : > { %v3354_v48 = vpack.c.bf16 %v2257_v4, %v2255_v60  ;;  %v2259_v41 = vld [vmem:[%s4992_s6 + $0x68] sm:$0xff]  ;;  %v3394_v4 = vpack.c.bf16 %v2297_v55, %v2295_v47 }
 0x7fe   : > { %v2093_v59 = vmul.f32 1.442695, %v2092_v53  ;;  %v2261_v53 = vld [vmem:[%s4992_s6 + $0x78] sm:$0xff] }
 0x7ff   : > { %v3604_v50 = vpop.permute.xlu0 %3603  ;;  %v3358_v33 = vpack.c.bf16 %v2261_v53, %v2259_v41 }
 0x800   : > { %3654 = vpow2.f32 %v2093_v59  ;;  %v3606_v7 = vunpack.i.h.bf16 %v3604_v50  ;;  %v3605_v17 = vunpack.i.l.bf16 %v3604_v50  ;;  %v3356_v59 = vpack.c.bf16 %v2256_v11, %v2254_v28  ;;  %v2258_v50 = vld [vmem:[%s4992_s6 + $0x60] sm:$0xff]  ;;  %v2299_v28 = vld [vmem:[%s4992_s6 + $0x1a8] sm:$0xff]  ;;  %v2301_v11 = vld [vmem:[%s4992_s6 + $0x1b8] sm:$0xff] }
 0x801   : > { %v3398_v53 = vpack.c.bf16 %v2301_v11, %v2299_v28 }
 0x802   : > { %v3323_v29 = vpack.c.bf16 %v3606_v7, %v3605_v17  ;;  %v2260_v7 = vld [vmem:[%s4992_s6 + $0x70] sm:$0xff]  ;;  %v2263_v17 = vld [vmem:[%s4992_s6 + $0x88] sm:$0xff] }
 0x803   : > { %v3614_v49 = vpop.permute.xlu0 %3613  ;;  %v3360_v39 = vpack.c.bf16 %v2260_v7, %v2258_v50  ;;  %v2303_v7 = vld [vmem:[%s4992_s6 + $0x1c8] sm:$0xff] }
 0x804   : > { %3324 = vmatpush3.bf16.msra.mxu0 %v3323_v29  ;;  %v3616_v63 = vunpack.i.h.bf16 %v3614_v49  ;;  %v3615_v5 = vunpack.i.l.bf16 %v3614_v49  ;;  %v3362_v29 = vpack.c.bf16 %v2265_v27, %v2263_v17  ;;  %v2262_v49 = vld [vmem:[%s4992_s6 + $0x80] sm:$0xff]  ;;  %v2305_v17 = vld [vmem:[%s4992_s6 + $0x1d8] sm:$0xff] }
 0x805   : > { %3325 = vmatprep.subr.bf16.mxu0 %v3823_v30  ;;  %v3402_v27 = vpack.c.bf16 %v2305_v17, %v2303_v7 }
 0x806   : > { %v3329_v43 = vpack.c.bf16 %v3616_v63, %v3615_v5  ;;  %v2267_v63 = vld [vmem:[%s4992_s6 + $0xa8] sm:$0xff]  ;;  %v2269_v5 = vld [vmem:[%s4992_s6 + $0xb8] sm:$0xff] }
 0x807   : > { %v3624_v3 = vpop.permute.xlu0 %3623 }
 0x808   : > { %3327 = vmatpush3.bf16.msra.mxu0 %v3326_v31  ;;  %v3626_v44 = vunpack.i.h.bf16 %v3624_v3  ;;  %v3625_v14 = vunpack.i.l.bf16 %v3624_v3  ;;  %v2264_v31 = vld [vmem:[%s4992_s6 + $0x90] sm:$0xff]  ;;  %v2273_v3 = vld [vmem:[%s4992_s6 + $0xd8] sm:$0xff] }
 0x809   : > { %3328 = vmatprep.subr.bf16.mxu0 %v3823_v30  ;;  %v3364_v23 = vpack.c.bf16 %v2264_v31, %v2262_v49  ;;  %v2307_v31 = vld [vmem:[%s4992_s6 + $0x1e8] sm:$0xff] }
 0x80a   : > { %v3655_v46 = vpop.eup %3654  ;;  %v3335_v2 = vpack.c.bf16 %v3626_v44, %v3625_v14  ;;  %v2270_v14 = vld [vmem:[%s4992_s6 + $0xc0] sm:$0xff] }
 0x80b   : > { %2095 = vadd.xlane.f32.xlu1 %v3655_v46  ;;  %v3634_v26 = vpop.permute.xlu0 %3633 }
 0x80c   : > { %3330 = vmatpush3.bf16.msra.mxu0 %v3329_v43  ;;  %v3636_v0 = vunpack.i.h.bf16 %v3634_v26  ;;  %v3635_v54 = vunpack.i.l.bf16 %v3634_v26  ;;  %v2271_v43 = vld [vmem:[%s4992_s6 + $0xc8] sm:$0xff]  ;;  %v3374_v26 = vpack.c.bf16 %v2277_v15, %v2275_v34 }
 0x80d   : > { %3331 = vmatprep.subr.bf16.mxu0 %v3823_v30  ;;  %v3370_v44 = vpack.c.bf16 %v2273_v3, %v2271_v43 }
 0x80e   : > { %v3341_v37 = vpack.c.bf16 %v3636_v0, %v3635_v54  ;;  %v2276_v0 = vld [vmem:[%s4992_s6 + $0xf0] sm:$0xff]  ;;  %v2279_v54 = vld [vmem:[%s4992_s6 + $0x108] sm:$0xff] }
 0x810   : > { %3333 = vmatpush3.bf16.msra.mxu0 %v3332_v12  ;;  %v3368_v12 = vpack.c.bf16 %v2268_v32, %v2266_v18 }
 0x811   : > { %3334 = vmatprep.subr.bf16.mxu0 %v3823_v30 }
 0x814   : > { %3336 = vmatpush3.bf16.msra.mxu0 %v3335_v2  ;;  %v3372_v2 = vpack.c.bf16 %v2272_v6, %v2270_v14 }
 0x815   : > { %3337 = vmatprep.subr.bf16.mxu0 %v3823_v30 }
 0x818   : > { %3339 = vmatpush3.bf16.msra.mxu0 %v3338_v45  ;;  %v2274_v45 = vld [vmem:[%s4992_s6 + $0xe0] sm:$0xff] }
 0x819   : > { %3340 = vmatprep.subr.bf16.mxu0 %v3823_v30 }
 0x81c   : > { %3638 = vrot.lane.b32.xlu1 %v3637_v25, %s3825_s29  ;;  %3342 = vmatpush3.bf16.msra.mxu0 %v3341_v37  ;;  %v2281_v37 = vld [vmem:[%s4992_s6 + $0x118] sm:$0xff] }
 0x81d   : > { %3343 = vmatprep.subr.bf16.mxu0 %v3823_v30 }
 0x820   : > { %1657 = vrot.lane.b32.xlu1 %v4597_v52, %s3825_s29 }
 0x898   : > { %v2096_v1 = vpop.xlane.xlu1 %2095 }
 0x899   : > { %3656 = vrcp.f32 %v2096_v1 }
 0x89c   : > { %v3639_v57 = vpop.permute.xlu1 %3638 }
 0x89d   : > { %v3641_v24 = vunpack.i.h.bf16 %v3639_v57  ;;  %v3640_v56 = vunpack.i.l.bf16 %v3639_v57  ;;  %v3378_v57 = vpack.c.bf16 %v2281_v37, %v2279_v54 }
 0x89f   : > { %v3344_v20 = vpack.c.bf16 %v3641_v24, %v3640_v56  ;;  %v2278_v24 = vld [vmem:[%s4992_s6 + $0x100] sm:$0xff]  ;;  %v2280_v56 = vld [vmem:[%s4992_s6 + $0x110] sm:$0xff] }
 0x8a0   : > { %v1658_v8 = vpop.permute.xlu1 %1657 }
 0x8a1   : > { %1661 = vst.msk [vmem:[#allocation5] sm:$0xff] %vm1660_vm5, %v1658_v8  ;;  %3345 = vmatpush3.bf16.msra.mxu0 %v3344_v20  ;;  %v2283_v20 = vld [vmem:[%s4992_s6 + $0x128] sm:$0xff]  ;;  %v2285_v8 = vld [vmem:[%s4992_s6 + $0x138] sm:$0xff] }
 0x8a2   : > { %3347 = vmatprep.subr.bf16.mxu0 %v3346_v58  ;;  %v2291_v58 = vld [vmem:[%s4992_s6 + $0x168] sm:$0xff] }
 0x8a3   : > { %v3657_v13 = vpop.eup %3656 }
 0x8a4   : > { %v2098_v51 = vmul.f32 %v3657_v13, %v2096_v1  ;;  %v3376_v1 = vpack.c.bf16 %v2276_v0, %v2274_v45 }
 0x8a6   : > { %v2099_v25 = vsub.f32 2.0, %v2098_v51  ;;  %v3382_v51 = vpack.c.bf16 %v2285_v8, %v2283_v20 }
 0x8a8   : > { %v2100_v30 = vmul.f32 %v3657_v13, %v2099_v25  ;;  %v3380_v13 = vpack.c.bf16 %v2280_v56, %v2278_v24  ;;  %v2282_v25 = vld [vmem:[%s4992_s6 + $0x120] sm:$0xff] }
 0x8aa   : > { %v2101_v36 = vmul.f32 %v3655_v46, %v2100_v30  ;;  %v3366_v46 = vpack.c.bf16 %v2269_v5, %v2267_v63  ;;  %v2284_v30 = vld [vmem:[%s4992_s6 + $0x130] sm:$0xff]  ;;  %v2309_v63 = vld [vmem:[%s4992_s6 + $0x1f8] sm:$0xff]  ;;  %v2306_v5 = vld [vmem:[%s4992_s6 + $0x1e0] sm:$0xff] }
 0x8ac   : > { %v2103_v52 = vadd.f32 %v2101_v36, %v4646_v22  ;;  %3108 = vmatmul.mubr.f32.vlgmr.msra.gmra.mrb[38].mxu0 %v2101_v36  ;;  %v2248_v22 = vld [vmem:[%s4992_s6 + $0x10] sm:$0xff]  ;;  %v2287_v36 = vld [vmem:[%s4992_s6 + $0x148] sm:$0xff] }
 0x8ad   : > { %v3348_v21 = vpack.c.bf16 %v2248_v22, %v2246_v19  ;;  %v2288_v19 = vld [vmem:[%s4992_s6 + $0x150] sm:$0xff]  ;;  %v2293_v22 = vld [vmem:[%s4992_s6 + $0x178] sm:$0xff] }
 0x8ae   : > { %v2396_v40 = vmul.f32 0.25, %v2103_v52  ;;  %v2289_v52 = vld [vmem:[%s4992_s6 + $0x158] sm:$0xff]  ;;  %v3388_v61 = vpack.c.bf16 %v2288_v19, %v2286_v10  ;;  %v3390_v16 = vpack.c.bf16 %v2293_v22, %v2291_v58 }
 0x8af   : > { %3349 = vmatpush1.bf16.msra.mxu0 %v3348_v21  ;;  %v3386_v62 = vpack.c.bf16 %v2289_v52, %v2287_v36  ;;  %v2290_v21 = vld [vmem:[%s4992_s6 + $0x160] sm:$0xff] }
 0x8b0   : > { %2397 = vst [vmem:[%s4711_s30] sm:$0xff] %v2396_v40  ;;  %3351 = vmatprep.subr.bf16.mxu0 %v3350_v42  ;;  %v3384_v40 = vpack.c.bf16 %v2284_v30, %v2282_v25  ;;  %v2292_v42 = vld [vmem:[%s4992_s6 + $0x170] sm:$0xff] }
 0x8b1   : > { %v3392_v60 = vpack.c.bf16 %v2292_v42, %v2290_v21 }
 0x8b3   : > { %3353 = vmatpush1.bf16.msra.mxu0 %v3352_v9  ;;  %v2294_v9 = vld [vmem:[%s4992_s6 + $0x180] sm:$0xff] }
 0x8b4   : > { %3355 = vmatprep.subr.bf16.mxu0 %v3354_v48  ;;  %v2296_v48 = vld [vmem:[%s4992_s6 + $0x190] sm:$0xff] }
 0x8b5   : > { %v3396_v41 = vpack.c.bf16 %v2296_v48, %v2294_v9 }
 0x8b7   : > { %3357 = vmatpush1.bf16.msra.mxu0 %v3356_v59  ;;  %v2298_v59 = vld [vmem:[%s4992_s6 + $0x1a0] sm:$0xff] }
 0x8b8   : > { %3359 = vmatprep.subr.bf16.mxu0 %v3358_v33  ;;  %v2300_v33 = vld [vmem:[%s4992_s6 + $0x1b0] sm:$0xff] }
 0x8b9   : > { %v3400_v50 = vpack.c.bf16 %v2300_v33, %v2298_v59 }
 0x8bb   : > { %3361 = vmatpush1.bf16.msra.mxu0 %v3360_v39  ;;  %v2302_v39 = vld [vmem:[%s4992_s6 + $0x1c0] sm:$0xff] }
 0x8bc   : > { %3363 = vmatprep.subr.bf16.mxu0 %v3362_v29  ;;  %v2304_v29 = vld [vmem:[%s4992_s6 + $0x1d0] sm:$0xff] }
 0x8bd   : > { %v3404_v49 = vpack.c.bf16 %v2304_v29, %v2302_v39 }
 0x8bf   : > { %3365 = vmatpush1.bf16.msra.mxu0 %v3364_v23  ;;  %v3406_v23 = vpack.c.bf16 %v2309_v63, %v2307_v31 }
 0x8c0   : > { %3367 = vmatprep.subr.bf16.mxu0 %v3366_v46  ;;  %v2308_v46 = vld [vmem:[%s4992_s6 + $0x1f0] sm:$0xff] }
 0x8c1   : > { %v3408_v18 = vpack.c.bf16 %v2308_v46, %v2306_v5 }
 0x8c3   : > { %3369 = vmatpush1.bf16.msra.mxu0 %v3368_v12 }
 0x8c4   : > { %3371 = vmatprep.subr.bf16.mxu0 %v3370_v44  ;;  %v2244_v44 = vld [vmem:[#allocation5] sm:$0xff] }
 0x8c7   : > { %3373 = vmatpush1.bf16.msra.mxu0 %v3372_v2 }
 0x8c8   : > { %3375 = vmatprep.subr.bf16.mxu0 %v3374_v26 }
 0x8cb   : > { %3377 = vmatpush1.bf16.msra.mxu0 %v3376_v1 }
 0x8cc   : > { %3379 = vmatprep.subr.bf16.mxu0 %v3378_v57 }
 0x8cf   : > { %3381 = vmatpush1.bf16.msra.mxu0 %v3380_v13 }
 0x8d0   : > { %3383 = vmatprep.subr.bf16.mxu0 %v3382_v51 }
 0x8d3   : > { %3385 = vmatpush1.bf16.msra.mxu0 %v3384_v40 }
 0x8d4   : > { %3387 = vmatprep.subr.bf16.mxu0 %v3386_v62 }
 0x8d7   : > { %3389 = vmatpush1.bf16.msra.mxu0 %v3388_v61 }
 0x8d8   : > { %3391 = vmatprep.subr.bf16.mxu0 %v3390_v16 }
 0x8db   : > { %3393 = vmatpush1.bf16.msra.mxu0 %v3392_v60 }
 0x8dc   : > { %3395 = vmatprep.subr.bf16.mxu0 %v3394_v4 }
 0x8df   : > { %3397 = vmatpush1.bf16.msra.mxu0 %v3396_v41 }
 0x8e0   : > { %3399 = vmatprep.subr.bf16.mxu0 %v3398_v53 }
 0x8e3   : > { %3401 = vmatpush1.bf16.msra.mxu0 %v3400_v50 }
 0x8e4   : > { %3403 = vmatprep.subr.bf16.mxu0 %v3402_v27 }
 0x8e7   : > { %3405 = vmatpush1.bf16.msra.mxu0 %v3404_v49 }
 0x8e8   : > { %3407 = vmatprep.subr.bf16.mxu0 %v3406_v23 }
 0x8eb   : > { %3409 = vmatpush1.bf16.msra.mxu0 %v3408_v18 }
 0x97f   : > { %v2235_v32 = vpop.f32.mrb[38].mxu0 }
 0x980   : > { %2240 = vrot.lane.b32.xlu0 %v2235_v32, %s3825_s29  ;;  %v3109_v43 = vpop.f32.mrb[39].mxu0  ;;  %s3827_s29 = smov [#allocation13]  }
 0x981   : > { %s3718_s18 = sshll.u32 %s3827_s29, 4  ;;  %s3719_s18 = int_to_ptr.vmem [resolvable:$false] %s3718_s18 }
 0x982   : > { %s3720_s20 = scalar_lea.vmem %s3719_s18, 256  ;;  %p3721_p4 = scmp.lt.s32.totalorder %s2432_s15, %s3719_s18 }
 0x983   : > { %p3722_p7 = scmp.lt.s32.totalorder %s3720_s20, %s3714_s22 }
 0x985   : > { %p3723_p8 = por %p3722_p7, %p3721_p4 }
 0x987   : > { %p3724_p11 = pnand %p3723_p8, %p3717_p3 }
 0x9f2   : > { %v2241_v3 = vpop.permute.xlu0 %2240 }
 0x9f3   : > { %2243 = vst.msk [vmem:[#allocation5 + $0x8] sm:$0xff] %vm1660_vm5, %v2241_v3 }
 0x9fa   : > { %v2245_v12 = vld [vmem:[#allocation5 + $0x8] sm:$0xff] }
 0x9fb   : > { %2386 = vmatprep.mubr.f32.mxu0 %v2245_v12 }
 0x9fc   : > { %2387 = vmatmul.mubr.f32.vlgmr.msra.gmra.mrb[40].mxu0 %v2244_v44 }
 0x9fd   : > { %3727 = shalt.err (!%p3724_p11)
}
 0x9fe   : > { %s3728_s30 = scalar_lea.hbm %s4913_s11, 128  ;;  %s3732_s26 = scalar_lea.hbm %s4996_s10, 256 }
 0x9ff   : > { %p3729_p13 = scmp.ne.s32.totalorder %s4913_s11, %s3728_s30  ;;  %p3733_p6 = scmp.lt.u32.totalorder %s4913_s11, %s4996_s10 }
 0xa00   : > { %p3734_p9 = scmp.lt.u32.totalorder %s3732_s26, %s3728_s30  ;;  %p3736_p12 = scmp.lt.u32.totalorder %s3728_s30, %s4913_s11 }
 0xa01   : > { %p3730_p5 = pnand %p3729_p13, %p5048_p1 }
 0xa02   : > { %p3735_p10 = por %p3734_p9, %p3733_p6 }
 0xa03   : > { %p3731_p0 = pneg %p3730_p5 }
 0xa04   : > { %p3737_p2 = por %p3736_p12, %p3735_p10 }
 0xa06   : > { %p3738_p3 = pnand %p3737_p2, %p3731_p0 }
 0xa08   : > { %3741 = shalt.err (!%p3738_p3)
}
 0xa09   : > { %3419 = dma.vmem_to_hbm [thread:$0]  (%p5048_p1), %s2432_s15, 128, %s4913_s11, %s2404_s12   ;;  %v2310_v14 = vld [vmem:[%s4994_s8] sm:$0x3] }
 0xa0a   : > { %s2576_s28 = sshll.u32 %s4707_s24, 4  ;;  %v2315_v6 = vrot.slane %v2310_v14, %v4108_v38  ;;  %v2319_v34 = vrot.slane %v2310_v14, %v4101_v35  ;;  %s2693_s18 = sshll.u32 %s3905_s17, 8 }
 0xa0b   : > { %s412_s20 = scalar_lea.vmem [#allocation12], %s2576_s28  ;;  %s4943_s11 = scalar_lea.hbm %s4995_s9, %s2693_s18 }
 0xa0c   : > { %s2418_s30 = sshll.u32 %s412_s20, 4  ;;  %s2399_s12 = scalar_lea.sflag [#allocation9], %s4707_s24  ;;  %s4945_s30 = int_to_ptr.vmem [resolvable:$true] %s2418_s30 }
 0xa0d   : > { %s3742_s17 = scalar_lea.vmem %s4945_s30, 256  ;;  %s3828_s21 = smov [#allocation12]  }
 0xa0e   : > { %p3743_p4 = scmp.ne.s32.totalorder %s4945_s30, %s3742_s17  ;;  %s3746_s26 = sshll.u32 %s3828_s21, 4  ;;  %s3747_s26 = int_to_ptr.vmem [resolvable:$false] %s3746_s26 }
 0xa0f   : > { %s3748_s27 = scalar_lea.vmem %s3747_s26, 512  ;;  %p3749_p11 = scmp.lt.s32.totalorder %s4945_s30, %s3747_s26 }
 0xa10   : > { %p3744_p7 = pnand %p3743_p4, %p5048_p1  ;;  %p3750_p13 = scmp.lt.s32.totalorder %s3748_s27, %s3742_s17 }
 0xa12   : > { %p3745_p8 = pneg %p3744_p7  ;;  %p3751_p5 = por %p3750_p13, %p3749_p11 }
 0xa14   : > { %p3752_p0 = pnand %p3751_p5, %p3745_p8 }
 0xacf   : > { %v2388_v15 = vpop.f32.mrb[40].mxu0 }
 0xad0   : > { %v2389_v2 = vadd.f32 %v2388_v15, %v2315_v6  ;;  %v2390_v26 = vpop.f32.mrb[41].mxu0 }
 0xad1   : > { %v2391_v45 = vadd.f32 %v2390_v26, %v2319_v34 }
 0xad2   : > { %2393 = vst [vmem:[%s412_s20] sm:$0xff] %v2389_v2 }
 0xad3   : > { %2394 = vst [vmem:[%s412_s20 + $0x8] sm:$0xff] %v2391_v45 }
 0xad4   : > { %3755 = shalt.err (!%p3752_p0)
}
 0xad5   : > { %s3756_s24 = scalar_lea.hbm %s4943_s11, 256  ;;  %s3760_s22 = scalar_lea.hbm %s4995_s9, 512 }
 0xad6   : > { %p3757_p6 = scmp.ne.s32.totalorder %s4943_s11, %s3756_s24  ;;  %p3761_p12 = scmp.lt.u32.totalorder %s4943_s11, %s4995_s9 }
 0xad7   : > { %p3762_p2 = scmp.lt.u32.totalorder %s3760_s22, %s3756_s24  ;;  %p3764_p4 = scmp.lt.u32.totalorder %s3756_s24, %s4943_s11 }
 0xad8   : > { %p3758_p9 = pnand %p3757_p6, %p5048_p1 }
 0xad9   : > { %p3763_p3 = por %p3762_p2, %p3761_p12 }
 0xada   : > { %p3759_p10 = pneg %p3758_p9 }
 0xadb   : > { %p3765_p7 = por %p3764_p4, %p3763_p3 }
 0xadd   : > { %p3766_p8 = pnand %p3765_p7, %p3759_p10 }
 0xadf   : > { %3769 = shalt.err (!%p3766_p8)
}
 0xae0   : > { %3418 = dma.vmem_to_hbm [thread:$0]  (%p5048_p1), %s4945_s30, 256, %s4943_s11, %s2399_s12  }
 0xae1 PF: > { %s5049_s20 = sld [smem:[#allocation22_spill]]  ;;  %p3440_p11 = scmp.ge.s32.totalorder %s3816_s16, 2 }
 0xae2   : > { %s2443_s25 = sand.u32 1, %s3804_s13  }
 0xae3   : > { %s2444_s15 = scalar_lea.sflag [#allocation9], %s2443_s25 }
 0xae7   : > { %p5050_p13 = scmp.ne.s32.totalorder %s5049_s20, 0 }
 0xae9   : > { %p3430_p5 = pnand %p3440_p11, %p5050_p13 }
 0xaeb   : > { %3795 = dma.done.wait (!%p3430_p5), %s2444_s15, 256  }
 0xaec   : > { %3797 = vsyncadd (!%p3430_p5), %s2444_s15, 4294967040  ;;  %s2453_s17 = scalar_lea.sflag [#allocation14], %s2443_s25 }
 0xaed   : > { %3799 = dma.done.wait (!%p3430_p5), %s2453_s17, 128  }
 0xaee   : > { %3801 = vsyncadd (!%p3430_p5), %s2453_s17, 4294967168  ;;  %s5051_s16 = sld [smem:[#allocation20_spill]]  ;;  %s5052_s23 = sld [smem:[#allocation19_spill]] }
 0xaef   : > { %s5053_s15 = sld [smem:[#allocation21_spill]]  ;;  %s5054_s13 = smov %s3808_s14 }
 0xaf4   : > { %p26_p1 = scmp.ge.s32.totalorder %s5051_s16, 4   ;;  %s5055_s14 = smov %s5052_s23 }
 0xaf6   :  { %28 = sbr.rel (!%p26_p1) target bundleno = 7 (0x7), region = 125 }
 0xafd   :  { %2458 = vsyncpa [#allocation8], 1 }
 0xafe   :  { %2460 = vsyncpa [#allocation8 + $0x1], 1 }
 0xaff   :  { %2461 = vsyncpa [#allocation11], 1 }
 0xb00   :  { %2462 = vsyncpa [#allocation9], 1 }
 0xb01   :  { %2464 = vsyncpa [#allocation9 + $0x1], 1 }
 0xb02   :  { %2465 = vsyncpa [#allocation14], 1 }
 0xb03   :  { %2467 = vsyncpa [#allocation14 + $0x1], 1 }

</bundles_post_ra>
